<compile_context>
chip_gen: v7x
topology: tpu7x:2x2x1
jax: 0.10.0
libtpu: 0.0.40
codegen_flags: <defaults>
</compile_context>

<pallas_src>
import math
import functools

import jax
import jax.numpy as jnp
from jax.experimental import pallas as pl
from jax.experimental.pallas import tpu as pltpu

EPS = 1e-6


def _pick_batch_tile(B, S, max_rows=2048):
    """Largest divisor of B with Bt*S <= max_rows (fills the MXU M dimension)."""
    bt = 1
    for c in range(1, B + 1):
        if B % c == 0 and c * S <= max_rows:
            bt = c
    return bt


def _decoder_block_kernel(x_ref, enc_ref,
                          wsqkv_ref, wso_ref,
                          wcq_ref, wckv_ref, wco_ref,
                          w1_ref, b1_ref, w2_ref, b2_ref,
                          gamma_ref, beta_ref, out_ref,
                          *, h, d_k):
    """One grid step = one batch tile (Bt, S, D). Everything lives in VMEM."""
    Bt, S, D = x_ref.shape
    Se = enc_ref.shape[1]
    Nq = Bt * S
    f32 = jnp.float32
    mm_dtype = wso_ref.dtype          # MXU operand dtype follows the weights (bf16-ready)

    # Residual stream kept in f32 for stable LN / adds.
    x = x_ref[...].reshape(Nq, D).astype(f32)            # (Nq, D)
    enc = enc_ref[...].reshape(Bt * Se, D)                # keep input dtype for the MXU

    inv_dm1 = 1.0 / (D - 1)

    def layer_norm(v, idx):                               # v: (Nq, D) f32
        g = gamma_ref[idx, :].astype(f32)
        b = beta_ref[idx, :].astype(f32)
        mean = jnp.mean(v, axis=-1, keepdims=True)
        c = v - mean
        # torch.std default: unbiased (divide by N-1); eps added to std, not variance.
        std = jnp.sqrt(jnp.sum(c * c, axis=-1, keepdims=True) * inv_dm1)
        inv = pl.reciprocal(std + EPS, approx=True)       # EUP, ~free
        return g[None, :] * (c * inv) + b[None, :]

    scale = 1.0 / math.sqrt(d_k)

    def softmax(s):                                       # s: (Bt, q, k) f32
        m = jnp.max(s, axis=-1, keepdims=True)
        p = jnp.exp(s - m)
        denom = jnp.sum(p, axis=-1, keepdims=True)
        return p * pl.reciprocal(denom, approx=True)

    def attend(q, k, v, wo_ref, s_q, s_k):
        # q: (Bt*s_q, D), k/v: (Bt*s_k, D), all f32 accumulators from the projections.
        qd = (q * scale).astype(mm_dtype)                 # fold 1/sqrt(d_k) once into Q
        kd = k.astype(mm_dtype)
        vd = v.astype(mm_dtype)
        head_outs = []
        for hh in range(h):                               # small h -> static unrolled loop
            lo = hh * d_k
            qh = qd[:, lo:lo + d_k].reshape(Bt, s_q, d_k)
            kh = kd[:, lo:lo + d_k].reshape(Bt, s_k, d_k)
            vh = vd[:, lo:lo + d_k].reshape(Bt, s_k, d_k)
            # NOTE: mask intentionally not applied (reference discards masked_fill result).
            s = jnp.einsum('bqd,bkd->bqk', qh, kh, preferred_element_type=f32)
            p = softmax(s).astype(mm_dtype)
            o = jnp.einsum('bqk,bkd->bqd', p, vh, preferred_element_type=f32)
            head_outs.append(o.reshape(Bt * s_q, d_k))
        cat = jnp.concatenate(head_outs, axis=-1).astype(mm_dtype)   # (Bt*s_q, D)
        return jnp.dot(cat, wo_ref[...], preferred_element_type=f32)

    # ---- residual 1: self-attention (fused QKV projection: one (Nq,D)x(D,3D) matmul) ----
    n0 = layer_norm(x, 0).astype(mm_dtype)
    qkv = jnp.dot(n0, wsqkv_ref[...], preferred_element_type=f32)    # (Nq, 3D)
    q = qkv[:, :D]
    k = qkv[:, D:2 * D]
    v = qkv[:, 2 * D:]
    x = x + attend(q, k, v, wso_ref, S, S)

    # ---- residual 2: cross-attention (Q from x; fused KV projection of encoder out) ----
    n1 = layer_norm(x, 1).astype(mm_dtype)
    qc = jnp.dot(n1, wcq_ref[...], preferred_element_type=f32)       # (Nq, D)
    kv = jnp.dot(enc.astype(mm_dtype), wckv_ref[...], preferred_element_type=f32)  # (Bt*Se, 2D)
    kc = kv[:, :D]
    vc = kv[:, D:]
    x = x + attend(qc, kc, vc, wco_ref, S, Se)

    # ---- residual 3: feed-forward ----
    n2 = layer_norm(x, 2).astype(mm_dtype)
    h1 = jnp.dot(n2, w1_ref[...], preferred_element_type=f32) + b1_ref[0, :].astype(f32)[None, :]
    h1 = jnp.maximum(h1, 0.0).astype(mm_dtype)
    y = jnp.dot(h1, w2_ref[...], preferred_element_type=f32) + b2_ref[0, :].astype(f32)[None, :]
    x = x + y

    out_ref[...] = x.reshape(Bt, S, D).astype(out_ref.dtype)


def decoder_block(x, encoder_out, src_mask, target_mask, params, *, h, batch_tile=None):
    # src_mask / target_mask accepted for signature parity but unused: the reference
    # module discards the result of masked_fill, so masks never affect the output.
    del src_mask, target_mask
    B, S, D = x.shape
    Se = encoder_out.shape[1]
    w_self, w_cross, w1, b1, w2, b2, gammas, betas = params
    d_ff = w1.shape[1]
    d_k = D // h

    # Pack weight slabs once, outside the kernel (one wide MXU matmul inside per projection).
    w_self_qkv = jnp.concatenate([w_self[0], w_self[1], w_self[2]], axis=1)   # (D, 3D)
    w_self_o = w_self[3]                                                      # (D, D)
    w_cross_q = w_cross[0]                                                    # (D, D)
    w_cross_kv = jnp.concatenate([w_cross[1], w_cross[2]], axis=1)            # (D, 2D)
    w_cross_o = w_cross[3]                                                    # (D, D)

    Bt = batch_tile if batch_tile is not None else _pick_batch_tile(B, S)
    assert B % Bt == 0, "batch tile must divide B"

    kernel = functools.partial(_decoder_block_kernel, h=h, d_k=d_k)

    def full(shape):
        return pl.BlockSpec(shape, lambda b: (0,) * len(shape))

    # NOTE: for production shapes (D~1k, d_ff~4k) raise vmem_limit_bytes and/or reduce Bt;
    # unnecessary at these toy sizes.
    return pl.pallas_call(
        kernel,
        out_shape=jax.ShapeDtypeStruct((B, S, D), x.dtype),
        grid=(B // Bt,),
        in_specs=[
            pl.BlockSpec((Bt, S, D), lambda b: (b, 0, 0)),    # x
            pl.BlockSpec((Bt, Se, D), lambda b: (b, 0, 0)),   # encoder_out
            full((D, 3 * D)),    # self-attn fused [wq|wk|wv]
            full((D, D)),        # self-attn wo
            full((D, D)),        # cross-attn wq
            full((D, 2 * D)),    # cross-attn fused [wk|wv]
            full((D, D)),        # cross-attn wo
            full((D, d_ff)),     # FFN linear_1 weight (in, out)
            full((1, d_ff)),     # FFN linear_1 bias
            full((d_ff, D)),     # FFN linear_2 weight (in, out)
            full((1, D)),        # FFN linear_2 bias
            full((3, D)),        # LayerNorm gammas (3 residual connections)
            full((3, D)),        # LayerNorm betas
        ],
        out_specs=pl.BlockSpec((Bt, S, D), lambda b: (b, 0, 0)),
        compiler_params=pltpu.CompilerParams(dimension_semantics=("parallel",)),
    )(x, encoder_out, w_self_qkv, w_self_o, w_cross_q, w_cross_kv, w_cross_o,
      w1, b1, w2, b2, gammas, betas)


def decoder_block_reference(x, enc, params, *, h):
    """Pure-JAX reference mirroring the PyTorch module (eval mode, mask ignored)."""
    w_self, w_cross, w1, b1, w2, b2, gammas, betas = params
    D = x.shape[-1]
    d_k = D // h

    def ln(v, i):
        mean = v.mean(-1, keepdims=True)
        std = jnp.sqrt(((v - mean) ** 2).sum(-1, keepdims=True) / (D - 1))
        return gammas[i] * (v - mean) / (std + EPS) + betas[i]

    def mha(q_in, k_in, v_in, w):
        q = q_in @ w[0]
        k = k_in @ w[1]
        v = v_in @ w[2]
        B_, Sq, _ = q.shape
        Sk = k.shape[1]
        qh = q.reshape(B_, Sq, h, d_k).transpose(0, 2, 1, 3)
        kh = k.reshape(B_, Sk, h, d_k).transpose(0, 2, 1, 3)
        vh = v.reshape(B_, Sk, h, d_k).transpose(0, 2, 1, 3)
        s = qh @ kh.transpose(0, 1, 3, 2) / math.sqrt(d_k)
        p = jax.nn.softmax(s, axis=-1)
        o = (p @ vh).transpose(0, 2, 1, 3).reshape(B_, Sq, D)
        return o @ w[3]

    def ffn(v):
        return jnp.maximum(v @ w1 + b1[0], 0.0) @ w2 + b2[0]

    x = x + mha(ln(x, 0), ln(x, 0), ln(x, 0), w_self)
    x = x + mha(ln(x, 1), enc, enc, w_cross)
    x = x + ffn(ln(x, 2))
    return x


if __name__ == "__main__":
    B, S, Se, D, H, D_FF = 2, 8, 8, 32, 4, 64

    key = jax.random.PRNGKey(0)
    keys = jax.random.split(key, 10)
    scale = 1.0 / math.sqrt(D)

    x = jax.random.normal(keys[0], (B, S, D), jnp.float32)
    encoder_out = jax.random.normal(keys[1], (B, Se, D), jnp.float32)
    src_mask = jnp.ones((B, 1, 1, Se), jnp.float32)     # unused (reference semantics)
    target_mask = jnp.ones((B, 1, S, S), jnp.float32)   # unused (reference semantics)

    w_self = jax.random.normal(keys[2], (4, D, D), jnp.float32) * scale
    w_cross = jax.random.normal(keys[3], (4, D, D), jnp.float32) * scale
    w1 = jax.random.normal(keys[4], (D, D_FF), jnp.float32) * scale
    b1 = jax.random.normal(keys[5], (1, D_FF), jnp.float32) * 0.01
    w2 = jax.random.normal(keys[6], (D_FF, D), jnp.float32) * (1.0 / math.sqrt(D_FF))
    b2 = jax.random.normal(keys[7], (1, D), jnp.float32) * 0.01
    gammas = jnp.ones((3, D), jnp.float32)   # LayerNormalization init: gamma = ones
    betas = jnp.zeros((3, D), jnp.float32)   # LayerNormalization init: beta = zeros

    params = (w_self, w_cross, w1, b1, w2, b2, gammas, betas)

    out = decoder_block(x, encoder_out, src_mask, target_mask, params, h=H)
    out = jax.block_until_ready(out)

    ref = decoder_block_reference(x, encoder_out, params, h=H)
    assert out.shape == (B, S, D)
    assert jnp.allclose(out, ref, rtol=1e-2, atol=1e-2), "mismatch vs pure-JAX reference"

    print("KERNEL_OK")
</pallas_src>

<mosaic_0001>
module attributes {stable_mosaic.version = 11 : i64} {
  func.func @_decoder_block_kernel(%arg0: i32, %arg1: memref<2x8x32xf32, #tpu.memory_space<vmem>>, %arg2: memref<2x8x32xf32, #tpu.memory_space<vmem>>, %arg3: memref<32x96xf32, #tpu.memory_space<vmem>>, %arg4: memref<32x32xf32, #tpu.memory_space<vmem>>, %arg5: memref<32x32xf32, #tpu.memory_space<vmem>>, %arg6: memref<32x64xf32, #tpu.memory_space<vmem>>, %arg7: memref<32x32xf32, #tpu.memory_space<vmem>>, %arg8: memref<32x64xf32, #tpu.memory_space<vmem>>, %arg9: memref<1x64xf32, #tpu.memory_space<vmem>>, %arg10: memref<64x32xf32, #tpu.memory_space<vmem>>, %arg11: memref<1x32xf32, #tpu.memory_space<vmem>>, %arg12: memref<3x32xf32, #tpu.memory_space<vmem>>, %arg13: memref<3x32xf32, #tpu.memory_space<vmem>>, %arg14: memref<2x8x32xf32, #tpu.memory_space<vmem>>) attributes {dimension_semantics = [#tpu.dimension_semantics<parallel>], iteration_bounds = array<i64: 1>, scalar_prefetch = 0 : i64, scratch_operands = 0 : i64, tpu.core_type = #tpu.core_type<tc>, window_params = [{transform_indices = @transform_0, window_bounds = array<i64: 2, 8, 32>}, {transform_indices = @transform_1, window_bounds = array<i64: 2, 8, 32>}, {pipeline_mode = #tpu.pipeline_mode<synchronous>, transform_indices = @transform_2, window_bounds = array<i64: 32, 96>}, {pipeline_mode = #tpu.pipeline_mode<synchronous>, transform_indices = @transform_3, window_bounds = array<i64: 32, 32>}, {pipeline_mode = #tpu.pipeline_mode<synchronous>, transform_indices = @transform_4, window_bounds = array<i64: 32, 32>}, {pipeline_mode = #tpu.pipeline_mode<synchronous>, transform_indices = @transform_5, window_bounds = array<i64: 32, 64>}, {pipeline_mode = #tpu.pipeline_mode<synchronous>, transform_indices = @transform_6, window_bounds = array<i64: 32, 32>}, {pipeline_mode = #tpu.pipeline_mode<synchronous>, transform_indices = @transform_7, window_bounds = array<i64: 32, 64>}, {pipeline_mode = #tpu.pipeline_mode<synchronous>, transform_indices = @transform_8, window_bounds = array<i64: 1, 64>}, {pipeline_mode = #tpu.pipeline_mode<synchronous>, transform_indices = @transform_9, window_bounds = array<i64: 64, 32>}, {pipeline_mode = #tpu.pipeline_mode<synchronous>, transform_indices = @transform_10, window_bounds = array<i64: 1, 32>}, {pipeline_mode = #tpu.pipeline_mode<synchronous>, transform_indices = @transform_11, window_bounds = array<i64: 3, 32>}, {pipeline_mode = #tpu.pipeline_mode<synchronous>, transform_indices = @transform_12, window_bounds = array<i64: 3, 32>}, {transform_indices = @transform_13, window_bounds = array<i64: 2, 8, 32>}]} {
    %c0 = arith.constant 0 : index
    %c0_0 = arith.constant 0 : index
    %c0_1 = arith.constant 0 : index
    %0 = vector.load %arg1[%c0, %c0_0, %c0_1] : memref<2x8x32xf32, #tpu.memory_space<vmem>>, vector<2x8x32xf32>
    %1 = vector.shape_cast %0 : vector<2x8x32xf32> to vector<16x32xf32>
    %c0_2 = arith.constant 0 : index
    %c0_3 = arith.constant 0 : index
    %c0_4 = arith.constant 0 : index
    %2 = vector.load %arg2[%c0_2, %c0_3, %c0_4] : memref<2x8x32xf32, #tpu.memory_space<vmem>>, vector<2x8x32xf32>
    %3 = vector.shape_cast %2 : vector<2x8x32xf32> to vector<16x32xf32>
    %c0_5 = arith.constant 0 : index
    %c0_6 = arith.constant 0 : index
    %4 = vector.load %arg12[%c0_5, %c0_6] : memref<3x32xf32, #tpu.memory_space<vmem>>, vector<1x32xf32>
    %5 = vector.shape_cast %4 : vector<1x32xf32> to vector<32xf32>
    %c0_7 = arith.constant 0 : index
    %c0_8 = arith.constant 0 : index
    %6 = vector.load %arg13[%c0_7, %c0_8] : memref<3x32xf32, #tpu.memory_space<vmem>>, vector<1x32xf32>
    %7 = vector.shape_cast %6 : vector<1x32xf32> to vector<32xf32>
    %cst = arith.constant dense<0.000000e+00> : vector<16xf32>
    %8 = vector.multi_reduction <add>, %1, %cst [1] : vector<16x32xf32> to vector<16xf32>
    %9 = vector.shape_cast %8 : vector<16xf32> to vector<16x1xf32>
    %cst_9 = arith.constant 3.200000e+01 : f32
    %10 = vector.broadcast %cst_9 : f32 to vector<16x1xf32>
    %11 = arith.divf %9, %10 : vector<16x1xf32>
    %12 = vector.broadcast %11 : vector<16x1xf32> to vector<16x32xf32>
    %13 = arith.subf %1, %12 : vector<16x32xf32>
    %14 = arith.mulf %13, %13 : vector<16x32xf32>
    %cst_10 = arith.constant dense<0.000000e+00> : vector<16xf32>
    %15 = vector.multi_reduction <add>, %14, %cst_10 [1] : vector<16x32xf32> to vector<16xf32>
    %16 = vector.shape_cast %15 : vector<16xf32> to vector<16x1xf32>
    %cst_11 = arith.constant 0.0322580636 : f32
    %17 = vector.broadcast %cst_11 : f32 to vector<16x1xf32>
    %18 = arith.mulf %16, %17 : vector<16x1xf32>
    %19 = math.sqrt %18 : vector<16x1xf32>
    %cst_12 = arith.constant 9.99999997E-7 : f32
    %20 = vector.broadcast %cst_12 : f32 to vector<16x1xf32>
    %21 = arith.addf %19, %20 : vector<16x1xf32>
    %22 = tpu.reciprocal %21 {approx = true} : vector<16x1xf32> -> vector<16x1xf32>
    %23 = vector.shape_cast %5 : vector<32xf32> to vector<1x32xf32>
    %24 = vector.broadcast %22 : vector<16x1xf32> to vector<16x32xf32>
    %25 = arith.mulf %13, %24 : vector<16x32xf32>
    %26 = vector.broadcast %23 : vector<1x32xf32> to vector<16x32xf32>
    %27 = arith.mulf %26, %25 : vector<16x32xf32>
    %28 = vector.shape_cast %7 : vector<32xf32> to vector<1x32xf32>
    %29 = vector.broadcast %28 : vector<1x32xf32> to vector<16x32xf32>
    %30 = arith.addf %27, %29 : vector<16x32xf32>
    %c0_13 = arith.constant 0 : index
    %c0_14 = arith.constant 0 : index
    %31 = vector.load %arg3[%c0_13, %c0_14] : memref<32x96xf32, #tpu.memory_space<vmem>>, vector<32x96xf32>
    %cst_15 = arith.constant dense<0.000000e+00> : vector<16x96xf32>
    %32 = tpu.matmul %30, %31, %cst_15 {dimension_numbers = #tpu.dot_dimension_numbers<[1], [0], [0], [1], [0, 0, 1, 1], [], []>} : vector<16x32xf32>, vector<32x96xf32>, vector<16x96xf32> -> vector<16x96xf32>
    %33 = vector.extract_strided_slice %32 {offsets = [0, 0], sizes = [16, 32], strides = [1, 1]} : vector<16x96xf32> to vector<16x32xf32>
    %34 = vector.extract_strided_slice %32 {offsets = [0, 32], sizes = [16, 32], strides = [1, 1]} : vector<16x96xf32> to vector<16x32xf32>
    %35 = vector.extract_strided_slice %32 {offsets = [0, 64], sizes = [16, 32], strides = [1, 1]} : vector<16x96xf32> to vector<16x32xf32>
    %cst_16 = arith.constant 0.353553385 : f32
    %36 = vector.broadcast %cst_16 : f32 to vector<16x32xf32>
    %37 = arith.mulf %33, %36 : vector<16x32xf32>
    %38 = vector.extract_strided_slice %37 {offsets = [0, 0], sizes = [16, 8], strides = [1, 1]} : vector<16x32xf32> to vector<16x8xf32>
    %39 = vector.shape_cast %38 : vector<16x8xf32> to vector<2x8x8xf32>
    %40 = vector.extract_strided_slice %34 {offsets = [0, 0], sizes = [16, 8], strides = [1, 1]} : vector<16x32xf32> to vector<16x8xf32>
    %41 = vector.shape_cast %40 : vector<16x8xf32> to vector<2x8x8xf32>
    %42 = vector.extract_strided_slice %35 {offsets = [0, 0], sizes = [16, 8], strides = [1, 1]} : vector<16x32xf32> to vector<16x8xf32>
    %43 = vector.shape_cast %42 : vector<16x8xf32> to vector<2x8x8xf32>
    "tpu.trace_start"() <{level = 10 : i32, message = "bqd,bkd->bqk"}> : () -> ()
    %cst_17 = arith.constant dense<0.000000e+00> : vector<2x8x8xf32>
    %44 = tpu.matmul %39, %41, %cst_17 {dimension_numbers = #tpu.dot_dimension_numbers<[2], [2], [1], [1], [0, 0, 0, 1, 1, 1], [0], [0]>} : vector<2x8x8xf32>, vector<2x8x8xf32>, vector<2x8x8xf32> -> vector<2x8x8xf32>
    "tpu.trace_stop"() : () -> ()
    %cst_18 = arith.constant dense<0xFF800000> : vector<2x8xf32>
    %45 = vector.multi_reduction <maximumf>, %44, %cst_18 [2] : vector<2x8x8xf32> to vector<2x8xf32>
    %46 = vector.shape_cast %45 : vector<2x8xf32> to vector<2x8x1xf32>
    %47 = vector.broadcast %46 : vector<2x8x1xf32> to vector<2x8x8xf32>
    %48 = arith.subf %44, %47 : vector<2x8x8xf32>
    %49 = math.exp %48 : vector<2x8x8xf32>
    %cst_19 = arith.constant dense<0.000000e+00> : vector<2x8xf32>
    %50 = vector.multi_reduction <add>, %49, %cst_19 [2] : vector<2x8x8xf32> to vector<2x8xf32>
    %51 = vector.shape_cast %50 : vector<2x8xf32> to vector<2x8x1xf32>
    %52 = tpu.reciprocal %51 {approx = true} : vector<2x8x1xf32> -> vector<2x8x1xf32>
    %53 = vector.broadcast %52 : vector<2x8x1xf32> to vector<2x8x8xf32>
    %54 = arith.mulf %49, %53 : vector<2x8x8xf32>
    "tpu.trace_start"() <{level = 10 : i32, message = "bqk,bkd->bqd"}> : () -> ()
    %cst_20 = arith.constant dense<0.000000e+00> : vector<2x8x8xf32>
    %55 = tpu.matmul %54, %43, %cst_20 {dimension_numbers = #tpu.dot_dimension_numbers<[2], [1], [1], [2], [0, 0, 0, 1, 1, 2], [0], [0]>} : vector<2x8x8xf32>, vector<2x8x8xf32>, vector<2x8x8xf32> -> vector<2x8x8xf32>
    "tpu.trace_stop"() : () -> ()
    %56 = vector.shape_cast %55 : vector<2x8x8xf32> to vector<16x8xf32>
    %57 = vector.extract_strided_slice %37 {offsets = [0, 8], sizes = [16, 8], strides = [1, 1]} : vector<16x32xf32> to vector<16x8xf32>
    %58 = vector.shape_cast %57 : vector<16x8xf32> to vector<2x8x8xf32>
    %59 = vector.extract_strided_slice %34 {offsets = [0, 8], sizes = [16, 8], strides = [1, 1]} : vector<16x32xf32> to vector<16x8xf32>
    %60 = vector.shape_cast %59 : vector<16x8xf32> to vector<2x8x8xf32>
    %61 = vector.extract_strided_slice %35 {offsets = [0, 8], sizes = [16, 8], strides = [1, 1]} : vector<16x32xf32> to vector<16x8xf32>
    %62 = vector.shape_cast %61 : vector<16x8xf32> to vector<2x8x8xf32>
    "tpu.trace_start"() <{level = 10 : i32, message = "bqd,bkd->bqk"}> : () -> ()
    %cst_21 = arith.constant dense<0.000000e+00> : vector<2x8x8xf32>
    %63 = tpu.matmul %58, %60, %cst_21 {dimension_numbers = #tpu.dot_dimension_numbers<[2], [2], [1], [1], [0, 0, 0, 1, 1, 1], [0], [0]>} : vector<2x8x8xf32>, vector<2x8x8xf32>, vector<2x8x8xf32> -> vector<2x8x8xf32>
    "tpu.trace_stop"() : () -> ()
    %cst_22 = arith.constant dense<0xFF800000> : vector<2x8xf32>
    %64 = vector.multi_reduction <maximumf>, %63, %cst_22 [2] : vector<2x8x8xf32> to vector<2x8xf32>
    %65 = vector.shape_cast %64 : vector<2x8xf32> to vector<2x8x1xf32>
    %66 = vector.broadcast %65 : vector<2x8x1xf32> to vector<2x8x8xf32>
    %67 = arith.subf %63, %66 : vector<2x8x8xf32>
    %68 = math.exp %67 : vector<2x8x8xf32>
    %cst_23 = arith.constant dense<0.000000e+00> : vector<2x8xf32>
    %69 = vector.multi_reduction <add>, %68, %cst_23 [2] : vector<2x8x8xf32> to vector<2x8xf32>
    %70 = vector.shape_cast %69 : vector<2x8xf32> to vector<2x8x1xf32>
    %71 = tpu.reciprocal %70 {approx = true} : vector<2x8x1xf32> -> vector<2x8x1xf32>
    %72 = vector.broadcast %71 : vector<2x8x1xf32> to vector<2x8x8xf32>
    %73 = arith.mulf %68, %72 : vector<2x8x8xf32>
    "tpu.trace_start"() <{level = 10 : i32, message = "bqk,bkd->bqd"}> : () -> ()
    %cst_24 = arith.constant dense<0.000000e+00> : vector<2x8x8xf32>
    %74 = tpu.matmul %73, %62, %cst_24 {dimension_numbers = #tpu.dot_dimension_numbers<[2], [1], [1], [2], [0, 0, 0, 1, 1, 2], [0], [0]>} : vector<2x8x8xf32>, vector<2x8x8xf32>, vector<2x8x8xf32> -> vector<2x8x8xf32>
    "tpu.trace_stop"() : () -> ()
    %75 = vector.shape_cast %74 : vector<2x8x8xf32> to vector<16x8xf32>
    %76 = vector.extract_strided_slice %37 {offsets = [0, 16], sizes = [16, 8], strides = [1, 1]} : vector<16x32xf32> to vector<16x8xf32>
    %77 = vector.shape_cast %76 : vector<16x8xf32> to vector<2x8x8xf32>
    %78 = vector.extract_strided_slice %34 {offsets = [0, 16], sizes = [16, 8], strides = [1, 1]} : vector<16x32xf32> to vector<16x8xf32>
    %79 = vector.shape_cast %78 : vector<16x8xf32> to vector<2x8x8xf32>
    %80 = vector.extract_strided_slice %35 {offsets = [0, 16], sizes = [16, 8], strides = [1, 1]} : vector<16x32xf32> to vector<16x8xf32>
    %81 = vector.shape_cast %80 : vector<16x8xf32> to vector<2x8x8xf32>
    "tpu.trace_start"() <{level = 10 : i32, message = "bqd,bkd->bqk"}> : () -> ()
    %cst_25 = arith.constant dense<0.000000e+00> : vector<2x8x8xf32>
    %82 = tpu.matmul %77, %79, %cst_25 {dimension_numbers = #tpu.dot_dimension_numbers<[2], [2], [1], [1], [0, 0, 0, 1, 1, 1], [0], [0]>} : vector<2x8x8xf32>, vector<2x8x8xf32>, vector<2x8x8xf32> -> vector<2x8x8xf32>
    "tpu.trace_stop"() : () -> ()
    %cst_26 = arith.constant dense<0xFF800000> : vector<2x8xf32>
    %83 = vector.multi_reduction <maximumf>, %82, %cst_26 [2] : vector<2x8x8xf32> to vector<2x8xf32>
    %84 = vector.shape_cast %83 : vector<2x8xf32> to vector<2x8x1xf32>
    %85 = vector.broadcast %84 : vector<2x8x1xf32> to vector<2x8x8xf32>
    %86 = arith.subf %82, %85 : vector<2x8x8xf32>
    %87 = math.exp %86 : vector<2x8x8xf32>
    %cst_27 = arith.constant dense<0.000000e+00> : vector<2x8xf32>
    %88 = vector.multi_reduction <add>, %87, %cst_27 [2] : vector<2x8x8xf32> to vector<2x8xf32>
    %89 = vector.shape_cast %88 : vector<2x8xf32> to vector<2x8x1xf32>
    %90 = tpu.reciprocal %89 {approx = true} : vector<2x8x1xf32> -> vector<2x8x1xf32>
    %91 = vector.broadcast %90 : vector<2x8x1xf32> to vector<2x8x8xf32>
    %92 = arith.mulf %87, %91 : vector<2x8x8xf32>
    "tpu.trace_start"() <{level = 10 : i32, message = "bqk,bkd->bqd"}> : () -> ()
    %cst_28 = arith.constant dense<0.000000e+00> : vector<2x8x8xf32>
    %93 = tpu.matmul %92, %81, %cst_28 {dimension_numbers = #tpu.dot_dimension_numbers<[2], [1], [1], [2], [0, 0, 0, 1, 1, 2], [0], [0]>} : vector<2x8x8xf32>, vector<2x8x8xf32>, vector<2x8x8xf32> -> vector<2x8x8xf32>
    "tpu.trace_stop"() : () -> ()
    %94 = vector.shape_cast %93 : vector<2x8x8xf32> to vector<16x8xf32>
    %95 = vector.extract_strided_slice %37 {offsets = [0, 24], sizes = [16, 8], strides = [1, 1]} : vector<16x32xf32> to vector<16x8xf32>
    %96 = vector.shape_cast %95 : vector<16x8xf32> to vector<2x8x8xf32>
    %97 = vector.extract_strided_slice %34 {offsets = [0, 24], sizes = [16, 8], strides = [1, 1]} : vector<16x32xf32> to vector<16x8xf32>
    %98 = vector.shape_cast %97 : vector<16x8xf32> to vector<2x8x8xf32>
    %99 = vector.extract_strided_slice %35 {offsets = [0, 24], sizes = [16, 8], strides = [1, 1]} : vector<16x32xf32> to vector<16x8xf32>
    %100 = vector.shape_cast %99 : vector<16x8xf32> to vector<2x8x8xf32>
    "tpu.trace_start"() <{level = 10 : i32, message = "bqd,bkd->bqk"}> : () -> ()
    %cst_29 = arith.constant dense<0.000000e+00> : vector<2x8x8xf32>
    %101 = tpu.matmul %96, %98, %cst_29 {dimension_numbers = #tpu.dot_dimension_numbers<[2], [2], [1], [1], [0, 0, 0, 1, 1, 1], [0], [0]>} : vector<2x8x8xf32>, vector<2x8x8xf32>, vector<2x8x8xf32> -> vector<2x8x8xf32>
    "tpu.trace_stop"() : () -> ()
    %cst_30 = arith.constant dense<0xFF800000> : vector<2x8xf32>
    %102 = vector.multi_reduction <maximumf>, %101, %cst_30 [2] : vector<2x8x8xf32> to vector<2x8xf32>
    %103 = vector.shape_cast %102 : vector<2x8xf32> to vector<2x8x1xf32>
    %104 = vector.broadcast %103 : vector<2x8x1xf32> to vector<2x8x8xf32>
    %105 = arith.subf %101, %104 : vector<2x8x8xf32>
    %106 = math.exp %105 : vector<2x8x8xf32>
    %cst_31 = arith.constant dense<0.000000e+00> : vector<2x8xf32>
    %107 = vector.multi_reduction <add>, %106, %cst_31 [2] : vector<2x8x8xf32> to vector<2x8xf32>
    %108 = vector.shape_cast %107 : vector<2x8xf32> to vector<2x8x1xf32>
    %109 = tpu.reciprocal %108 {approx = true} : vector<2x8x1xf32> -> vector<2x8x1xf32>
    %110 = vector.broadcast %109 : vector<2x8x1xf32> to vector<2x8x8xf32>
    %111 = arith.mulf %106, %110 : vector<2x8x8xf32>
    "tpu.trace_start"() <{level = 10 : i32, message = "bqk,bkd->bqd"}> : () -> ()
    %cst_32 = arith.constant dense<0.000000e+00> : vector<2x8x8xf32>
    %112 = tpu.matmul %111, %100, %cst_32 {dimension_numbers = #tpu.dot_dimension_numbers<[2], [1], [1], [2], [0, 0, 0, 1, 1, 2], [0], [0]>} : vector<2x8x8xf32>, vector<2x8x8xf32>, vector<2x8x8xf32> -> vector<2x8x8xf32>
    "tpu.trace_stop"() : () -> ()
    %113 = vector.shape_cast %112 : vector<2x8x8xf32> to vector<16x8xf32>
    %114 = tpu.concatenate %56, %75, %94, %113 in 1 : vector<16x8xf32>, vector<16x8xf32>, vector<16x8xf32>, vector<16x8xf32> -> vector<16x32xf32>
    %c0_33 = arith.constant 0 : index
    %c0_34 = arith.constant 0 : index
    %115 = vector.load %arg4[%c0_33, %c0_34] : memref<32x32xf32, #tpu.memory_space<vmem>>, vector<32x32xf32>
    %cst_35 = arith.constant dense<0.000000e+00> : vector<16x32xf32>
    %116 = tpu.matmul %114, %115, %cst_35 {dimension_numbers = #tpu.dot_dimension_numbers<[1], [0], [0], [1], [0, 0, 1, 1], [], []>} : vector<16x32xf32>, vector<32x32xf32>, vector<16x32xf32> -> vector<16x32xf32>
    %117 = arith.addf %1, %116 : vector<16x32xf32>
    %c1 = arith.constant 1 : index
    %c0_36 = arith.constant 0 : index
    %118 = vector.load %arg12[%c1, %c0_36] : memref<3x32xf32, #tpu.memory_space<vmem>>, vector<1x32xf32>
    %119 = vector.shape_cast %118 : vector<1x32xf32> to vector<32xf32>
    %c1_37 = arith.constant 1 : index
    %c0_38 = arith.constant 0 : index
    %120 = vector.load %arg13[%c1_37, %c0_38] : memref<3x32xf32, #tpu.memory_space<vmem>>, vector<1x32xf32>
    %121 = vector.shape_cast %120 : vector<1x32xf32> to vector<32xf32>
    %cst_39 = arith.constant dense<0.000000e+00> : vector<16xf32>
    %122 = vector.multi_reduction <add>, %117, %cst_39 [1] : vector<16x32xf32> to vector<16xf32>
    %123 = vector.shape_cast %122 : vector<16xf32> to vector<16x1xf32>
    %cst_40 = arith.constant 3.200000e+01 : f32
    %124 = vector.broadcast %cst_40 : f32 to vector<16x1xf32>
    %125 = arith.divf %123, %124 : vector<16x1xf32>
    %126 = vector.broadcast %125 : vector<16x1xf32> to vector<16x32xf32>
    %127 = arith.subf %117, %126 : vector<16x32xf32>
    %128 = arith.mulf %127, %127 : vector<16x32xf32>
    %cst_41 = arith.constant dense<0.000000e+00> : vector<16xf32>
    %129 = vector.multi_reduction <add>, %128, %cst_41 [1] : vector<16x32xf32> to vector<16xf32>
    %130 = vector.shape_cast %129 : vector<16xf32> to vector<16x1xf32>
    %cst_42 = arith.constant 0.0322580636 : f32
    %131 = vector.broadcast %cst_42 : f32 to vector<16x1xf32>
    %132 = arith.mulf %130, %131 : vector<16x1xf32>
    %133 = math.sqrt %132 : vector<16x1xf32>
    %cst_43 = arith.constant 9.99999997E-7 : f32
    %134 = vector.broadcast %cst_43 : f32 to vector<16x1xf32>
    %135 = arith.addf %133, %134 : vector<16x1xf32>
    %136 = tpu.reciprocal %135 {approx = true} : vector<16x1xf32> -> vector<16x1xf32>
    %137 = vector.shape_cast %119 : vector<32xf32> to vector<1x32xf32>
    %138 = vector.broadcast %136 : vector<16x1xf32> to vector<16x32xf32>
    %139 = arith.mulf %127, %138 : vector<16x32xf32>
    %140 = vector.broadcast %137 : vector<1x32xf32> to vector<16x32xf32>
    %141 = arith.mulf %140, %139 : vector<16x32xf32>
    %142 = vector.shape_cast %121 : vector<32xf32> to vector<1x32xf32>
    %143 = vector.broadcast %142 : vector<1x32xf32> to vector<16x32xf32>
    %144 = arith.addf %141, %143 : vector<16x32xf32>
    %c0_44 = arith.constant 0 : index
    %c0_45 = arith.constant 0 : index
    %145 = vector.load %arg5[%c0_44, %c0_45] : memref<32x32xf32, #tpu.memory_space<vmem>>, vector<32x32xf32>
    %cst_46 = arith.constant dense<0.000000e+00> : vector<16x32xf32>
    %146 = tpu.matmul %144, %145, %cst_46 {dimension_numbers = #tpu.dot_dimension_numbers<[1], [0], [0], [1], [0, 0, 1, 1], [], []>} : vector<16x32xf32>, vector<32x32xf32>, vector<16x32xf32> -> vector<16x32xf32>
    %c0_47 = arith.constant 0 : index
    %c0_48 = arith.constant 0 : index
    %147 = vector.load %arg6[%c0_47, %c0_48] : memref<32x64xf32, #tpu.memory_space<vmem>>, vector<32x64xf32>
    %cst_49 = arith.constant dense<0.000000e+00> : vector<16x64xf32>
    %148 = tpu.matmul %3, %147, %cst_49 {dimension_numbers = #tpu.dot_dimension_numbers<[1], [0], [0], [1], [0, 0, 1, 1], [], []>} : vector<16x32xf32>, vector<32x64xf32>, vector<16x64xf32> -> vector<16x64xf32>
    %149 = vector.extract_strided_slice %148 {offsets = [0, 0], sizes = [16, 32], strides = [1, 1]} : vector<16x64xf32> to vector<16x32xf32>
    %150 = vector.extract_strided_slice %148 {offsets = [0, 32], sizes = [16, 32], strides = [1, 1]} : vector<16x64xf32> to vector<16x32xf32>
    %cst_50 = arith.constant 0.353553385 : f32
    %151 = vector.broadcast %cst_50 : f32 to vector<16x32xf32>
    %152 = arith.mulf %146, %151 : vector<16x32xf32>
    %153 = vector.extract_strided_slice %152 {offsets = [0, 0], sizes = [16, 8], strides = [1, 1]} : vector<16x32xf32> to vector<16x8xf32>
    %154 = vector.shape_cast %153 : vector<16x8xf32> to vector<2x8x8xf32>
    %155 = vector.extract_strided_slice %149 {offsets = [0, 0], sizes = [16, 8], strides = [1, 1]} : vector<16x32xf32> to vector<16x8xf32>
    %156 = vector.shape_cast %155 : vector<16x8xf32> to vector<2x8x8xf32>
    %157 = vector.extract_strided_slice %150 {offsets = [0, 0], sizes = [16, 8], strides = [1, 1]} : vector<16x32xf32> to vector<16x8xf32>
    %158 = vector.shape_cast %157 : vector<16x8xf32> to vector<2x8x8xf32>
    "tpu.trace_start"() <{level = 10 : i32, message = "bqd,bkd->bqk"}> : () -> ()
    %cst_51 = arith.constant dense<0.000000e+00> : vector<2x8x8xf32>
    %159 = tpu.matmul %154, %156, %cst_51 {dimension_numbers = #tpu.dot_dimension_numbers<[2], [2], [1], [1], [0, 0, 0, 1, 1, 1], [0], [0]>} : vector<2x8x8xf32>, vector<2x8x8xf32>, vector<2x8x8xf32> -> vector<2x8x8xf32>
    "tpu.trace_stop"() : () -> ()
    %cst_52 = arith.constant dense<0xFF800000> : vector<2x8xf32>
    %160 = vector.multi_reduction <maximumf>, %159, %cst_52 [2] : vector<2x8x8xf32> to vector<2x8xf32>
    %161 = vector.shape_cast %160 : vector<2x8xf32> to vector<2x8x1xf32>
    %162 = vector.broadcast %161 : vector<2x8x1xf32> to vector<2x8x8xf32>
    %163 = arith.subf %159, %162 : vector<2x8x8xf32>
    %164 = math.exp %163 : vector<2x8x8xf32>
    %cst_53 = arith.constant dense<0.000000e+00> : vector<2x8xf32>
    %165 = vector.multi_reduction <add>, %164, %cst_53 [2] : vector<2x8x8xf32> to vector<2x8xf32>
    %166 = vector.shape_cast %165 : vector<2x8xf32> to vector<2x8x1xf32>
    %167 = tpu.reciprocal %166 {approx = true} : vector<2x8x1xf32> -> vector<2x8x1xf32>
    %168 = vector.broadcast %167 : vector<2x8x1xf32> to vector<2x8x8xf32>
    %169 = arith.mulf %164, %168 : vector<2x8x8xf32>
    "tpu.trace_start"() <{level = 10 : i32, message = "bqk,bkd->bqd"}> : () -> ()
    %cst_54 = arith.constant dense<0.000000e+00> : vector<2x8x8xf32>
    %170 = tpu.matmul %169, %158, %cst_54 {dimension_numbers = #tpu.dot_dimension_numbers<[2], [1], [1], [2], [0, 0, 0, 1, 1, 2], [0], [0]>} : vector<2x8x8xf32>, vector<2x8x8xf32>, vector<2x8x8xf32> -> vector<2x8x8xf32>
    "tpu.trace_stop"() : () -> ()
    %171 = vector.shape_cast %170 : vector<2x8x8xf32> to vector<16x8xf32>
    %172 = vector.extract_strided_slice %152 {offsets = [0, 8], sizes = [16, 8], strides = [1, 1]} : vector<16x32xf32> to vector<16x8xf32>
    %173 = vector.shape_cast %172 : vector<16x8xf32> to vector<2x8x8xf32>
    %174 = vector.extract_strided_slice %149 {offsets = [0, 8], sizes = [16, 8], strides = [1, 1]} : vector<16x32xf32> to vector<16x8xf32>
    %175 = vector.shape_cast %174 : vector<16x8xf32> to vector<2x8x8xf32>
    %176 = vector.extract_strided_slice %150 {offsets = [0, 8], sizes = [16, 8], strides = [1, 1]} : vector<16x32xf32> to vector<16x8xf32>
    %177 = vector.shape_cast %176 : vector<16x8xf32> to vector<2x8x8xf32>
    "tpu.trace_start"() <{level = 10 : i32, message = "bqd,bkd->bqk"}> : () -> ()
    %cst_55 = arith.constant dense<0.000000e+00> : vector<2x8x8xf32>
    %178 = tpu.matmul %173, %175, %cst_55 {dimension_numbers = #tpu.dot_dimension_numbers<[2], [2], [1], [1], [0, 0, 0, 1, 1, 1], [0], [0]>} : vector<2x8x8xf32>, vector<2x8x8xf32>, vector<2x8x8xf32> -> vector<2x8x8xf32>
    "tpu.trace_stop"() : () -> ()
    %cst_56 = arith.constant dense<0xFF800000> : vector<2x8xf32>
    %179 = vector.multi_reduction <maximumf>, %178, %cst_56 [2] : vector<2x8x8xf32> to vector<2x8xf32>
    %180 = vector.shape_cast %179 : vector<2x8xf32> to vector<2x8x1xf32>
    %181 = vector.broadcast %180 : vector<2x8x1xf32> to vector<2x8x8xf32>
    %182 = arith.subf %178, %181 : vector<2x8x8xf32>
    %183 = math.exp %182 : vector<2x8x8xf32>
    %cst_57 = arith.constant dense<0.000000e+00> : vector<2x8xf32>
    %184 = vector.multi_reduction <add>, %183, %cst_57 [2] : vector<2x8x8xf32> to vector<2x8xf32>
    %185 = vector.shape_cast %184 : vector<2x8xf32> to vector<2x8x1xf32>
    %186 = tpu.reciprocal %185 {approx = true} : vector<2x8x1xf32> -> vector<2x8x1xf32>
    %187 = vector.broadcast %186 : vector<2x8x1xf32> to vector<2x8x8xf32>
    %188 = arith.mulf %183, %187 : vector<2x8x8xf32>
    "tpu.trace_start"() <{level = 10 : i32, message = "bqk,bkd->bqd"}> : () -> ()
    %cst_58 = arith.constant dense<0.000000e+00> : vector<2x8x8xf32>
    %189 = tpu.matmul %188, %177, %cst_58 {dimension_numbers = #tpu.dot_dimension_numbers<[2], [1], [1], [2], [0, 0, 0, 1, 1, 2], [0], [0]>} : vector<2x8x8xf32>, vector<2x8x8xf32>, vector<2x8x8xf32> -> vector<2x8x8xf32>
    "tpu.trace_stop"() : () -> ()
    %190 = vector.shape_cast %189 : vector<2x8x8xf32> to vector<16x8xf32>
    %191 = vector.extract_strided_slice %152 {offsets = [0, 16], sizes = [16, 8], strides = [1, 1]} : vector<16x32xf32> to vector<16x8xf32>
    %192 = vector.shape_cast %191 : vector<16x8xf32> to vector<2x8x8xf32>
    %193 = vector.extract_strided_slice %149 {offsets = [0, 16], sizes = [16, 8], strides = [1, 1]} : vector<16x32xf32> to vector<16x8xf32>
    %194 = vector.shape_cast %193 : vector<16x8xf32> to vector<2x8x8xf32>
    %195 = vector.extract_strided_slice %150 {offsets = [0, 16], sizes = [16, 8], strides = [1, 1]} : vector<16x32xf32> to vector<16x8xf32>
    %196 = vector.shape_cast %195 : vector<16x8xf32> to vector<2x8x8xf32>
    "tpu.trace_start"() <{level = 10 : i32, message = "bqd,bkd->bqk"}> : () -> ()
    %cst_59 = arith.constant dense<0.000000e+00> : vector<2x8x8xf32>
    %197 = tpu.matmul %192, %194, %cst_59 {dimension_numbers = #tpu.dot_dimension_numbers<[2], [2], [1], [1], [0, 0, 0, 1, 1, 1], [0], [0]>} : vector<2x8x8xf32>, vector<2x8x8xf32>, vector<2x8x8xf32> -> vector<2x8x8xf32>
    "tpu.trace_stop"() : () -> ()
    %cst_60 = arith.constant dense<0xFF800000> : vector<2x8xf32>
    %198 = vector.multi_reduction <maximumf>, %197, %cst_60 [2] : vector<2x8x8xf32> to vector<2x8xf32>
    %199 = vector.shape_cast %198 : vector<2x8xf32> to vector<2x8x1xf32>
    %200 = vector.broadcast %199 : vector<2x8x1xf32> to vector<2x8x8xf32>
    %201 = arith.subf %197, %200 : vector<2x8x8xf32>
    %202 = math.exp %201 : vector<2x8x8xf32>
    %cst_61 = arith.constant dense<0.000000e+00> : vector<2x8xf32>
    %203 = vector.multi_reduction <add>, %202, %cst_61 [2] : vector<2x8x8xf32> to vector<2x8xf32>
    %204 = vector.shape_cast %203 : vector<2x8xf32> to vector<2x8x1xf32>
    %205 = tpu.reciprocal %204 {approx = true} : vector<2x8x1xf32> -> vector<2x8x1xf32>
    %206 = vector.broadcast %205 : vector<2x8x1xf32> to vector<2x8x8xf32>
    %207 = arith.mulf %202, %206 : vector<2x8x8xf32>
    "tpu.trace_start"() <{level = 10 : i32, message = "bqk,bkd->bqd"}> : () -> ()
    %cst_62 = arith.constant dense<0.000000e+00> : vector<2x8x8xf32>
    %208 = tpu.matmul %207, %196, %cst_62 {dimension_numbers = #tpu.dot_dimension_numbers<[2], [1], [1], [2], [0, 0, 0, 1, 1, 2], [0], [0]>} : vector<2x8x8xf32>, vector<2x8x8xf32>, vector<2x8x8xf32> -> vector<2x8x8xf32>
    "tpu.trace_stop"() : () -> ()
    %209 = vector.shape_cast %208 : vector<2x8x8xf32> to vector<16x8xf32>
    %210 = vector.extract_strided_slice %152 {offsets = [0, 24], sizes = [16, 8], strides = [1, 1]} : vector<16x32xf32> to vector<16x8xf32>
    %211 = vector.shape_cast %210 : vector<16x8xf32> to vector<2x8x8xf32>
    %212 = vector.extract_strided_slice %149 {offsets = [0, 24], sizes = [16, 8], strides = [1, 1]} : vector<16x32xf32> to vector<16x8xf32>
    %213 = vector.shape_cast %212 : vector<16x8xf32> to vector<2x8x8xf32>
    %214 = vector.extract_strided_slice %150 {offsets = [0, 24], sizes = [16, 8], strides = [1, 1]} : vector<16x32xf32> to vector<16x8xf32>
    %215 = vector.shape_cast %214 : vector<16x8xf32> to vector<2x8x8xf32>
    "tpu.trace_start"() <{level = 10 : i32, message = "bqd,bkd->bqk"}> : () -> ()
    %cst_63 = arith.constant dense<0.000000e+00> : vector<2x8x8xf32>
    %216 = tpu.matmul %211, %213, %cst_63 {dimension_numbers = #tpu.dot_dimension_numbers<[2], [2], [1], [1], [0, 0, 0, 1, 1, 1], [0], [0]>} : vector<2x8x8xf32>, vector<2x8x8xf32>, vector<2x8x8xf32> -> vector<2x8x8xf32>
    "tpu.trace_stop"() : () -> ()
    %cst_64 = arith.constant dense<0xFF800000> : vector<2x8xf32>
    %217 = vector.multi_reduction <maximumf>, %216, %cst_64 [2] : vector<2x8x8xf32> to vector<2x8xf32>
    %218 = vector.shape_cast %217 : vector<2x8xf32> to vector<2x8x1xf32>
    %219 = vector.broadcast %218 : vector<2x8x1xf32> to vector<2x8x8xf32>
    %220 = arith.subf %216, %219 : vector<2x8x8xf32>
    %221 = math.exp %220 : vector<2x8x8xf32>
    %cst_65 = arith.constant dense<0.000000e+00> : vector<2x8xf32>
    %222 = vector.multi_reduction <add>, %221, %cst_65 [2] : vector<2x8x8xf32> to vector<2x8xf32>
    %223 = vector.shape_cast %222 : vector<2x8xf32> to vector<2x8x1xf32>
    %224 = tpu.reciprocal %223 {approx = true} : vector<2x8x1xf32> -> vector<2x8x1xf32>
    %225 = vector.broadcast %224 : vector<2x8x1xf32> to vector<2x8x8xf32>
    %226 = arith.mulf %221, %225 : vector<2x8x8xf32>
    "tpu.trace_start"() <{level = 10 : i32, message = "bqk,bkd->bqd"}> : () -> ()
    %cst_66 = arith.constant dense<0.000000e+00> : vector<2x8x8xf32>
    %227 = tpu.matmul %226, %215, %cst_66 {dimension_numbers = #tpu.dot_dimension_numbers<[2], [1], [1], [2], [0, 0, 0, 1, 1, 2], [0], [0]>} : vector<2x8x8xf32>, vector<2x8x8xf32>, vector<2x8x8xf32> -> vector<2x8x8xf32>
    "tpu.trace_stop"() : () -> ()
    %228 = vector.shape_cast %227 : vector<2x8x8xf32> to vector<16x8xf32>
    %229 = tpu.concatenate %171, %190, %209, %228 in 1 : vector<16x8xf32>, vector<16x8xf32>, vector<16x8xf32>, vector<16x8xf32> -> vector<16x32xf32>
    %c0_67 = arith.constant 0 : index
    %c0_68 = arith.constant 0 : index
    %230 = vector.load %arg7[%c0_67, %c0_68] : memref<32x32xf32, #tpu.memory_space<vmem>>, vector<32x32xf32>
    %cst_69 = arith.constant dense<0.000000e+00> : vector<16x32xf32>
    %231 = tpu.matmul %229, %230, %cst_69 {dimension_numbers = #tpu.dot_dimension_numbers<[1], [0], [0], [1], [0, 0, 1, 1], [], []>} : vector<16x32xf32>, vector<32x32xf32>, vector<16x32xf32> -> vector<16x32xf32>
    %232 = arith.addf %117, %231 : vector<16x32xf32>
    %c2 = arith.constant 2 : index
    %c0_70 = arith.constant 0 : index
    %233 = vector.load %arg12[%c2, %c0_70] : memref<3x32xf32, #tpu.memory_space<vmem>>, vector<1x32xf32>
    %234 = vector.shape_cast %233 : vector<1x32xf32> to vector<32xf32>
    %c2_71 = arith.constant 2 : index
    %c0_72 = arith.constant 0 : index
    %235 = vector.load %arg13[%c2_71, %c0_72] : memref<3x32xf32, #tpu.memory_space<vmem>>, vector<1x32xf32>
    %236 = vector.shape_cast %235 : vector<1x32xf32> to vector<32xf32>
    %cst_73 = arith.constant dense<0.000000e+00> : vector<16xf32>
    %237 = vector.multi_reduction <add>, %232, %cst_73 [1] : vector<16x32xf32> to vector<16xf32>
    %238 = vector.shape_cast %237 : vector<16xf32> to vector<16x1xf32>
    %cst_74 = arith.constant 3.200000e+01 : f32
    %239 = vector.broadcast %cst_74 : f32 to vector<16x1xf32>
    %240 = arith.divf %238, %239 : vector<16x1xf32>
    %241 = vector.broadcast %240 : vector<16x1xf32> to vector<16x32xf32>
    %242 = arith.subf %232, %241 : vector<16x32xf32>
    %243 = arith.mulf %242, %242 : vector<16x32xf32>
    %cst_75 = arith.constant dense<0.000000e+00> : vector<16xf32>
    %244 = vector.multi_reduction <add>, %243, %cst_75 [1] : vector<16x32xf32> to vector<16xf32>
    %245 = vector.shape_cast %244 : vector<16xf32> to vector<16x1xf32>
    %cst_76 = arith.constant 0.0322580636 : f32
    %246 = vector.broadcast %cst_76 : f32 to vector<16x1xf32>
    %247 = arith.mulf %245, %246 : vector<16x1xf32>
    %248 = math.sqrt %247 : vector<16x1xf32>
    %cst_77 = arith.constant 9.99999997E-7 : f32
    %249 = vector.broadcast %cst_77 : f32 to vector<16x1xf32>
    %250 = arith.addf %248, %249 : vector<16x1xf32>
    %251 = tpu.reciprocal %250 {approx = true} : vector<16x1xf32> -> vector<16x1xf32>
    %252 = vector.shape_cast %234 : vector<32xf32> to vector<1x32xf32>
    %253 = vector.broadcast %251 : vector<16x1xf32> to vector<16x32xf32>
    %254 = arith.mulf %242, %253 : vector<16x32xf32>
    %255 = vector.broadcast %252 : vector<1x32xf32> to vector<16x32xf32>
    %256 = arith.mulf %255, %254 : vector<16x32xf32>
    %257 = vector.shape_cast %236 : vector<32xf32> to vector<1x32xf32>
    %258 = vector.broadcast %257 : vector<1x32xf32> to vector<16x32xf32>
    %259 = arith.addf %256, %258 : vector<16x32xf32>
    %c0_78 = arith.constant 0 : index
    %c0_79 = arith.constant 0 : index
    %260 = vector.load %arg8[%c0_78, %c0_79] : memref<32x64xf32, #tpu.memory_space<vmem>>, vector<32x64xf32>
    %cst_80 = arith.constant dense<0.000000e+00> : vector<16x64xf32>
    %261 = tpu.matmul %259, %260, %cst_80 {dimension_numbers = #tpu.dot_dimension_numbers<[1], [0], [0], [1], [0, 0, 1, 1], [], []>} : vector<16x32xf32>, vector<32x64xf32>, vector<16x64xf32> -> vector<16x64xf32>
    %c0_81 = arith.constant 0 : index
    %c0_82 = arith.constant 0 : index
    %262 = vector.load %arg9[%c0_81, %c0_82] : memref<1x64xf32, #tpu.memory_space<vmem>>, vector<1x64xf32>
    %263 = vector.shape_cast %262 : vector<1x64xf32> to vector<64xf32>
    %264 = vector.shape_cast %263 : vector<64xf32> to vector<1x64xf32>
    %265 = vector.broadcast %264 : vector<1x64xf32> to vector<16x64xf32>
    %266 = arith.addf %261, %265 : vector<16x64xf32>
    %cst_83 = arith.constant 0.000000e+00 : f32
    %267 = vector.broadcast %cst_83 : f32 to vector<16x64xf32>
    %268 = arith.maximumf %266, %267 : vector<16x64xf32>
    %c0_84 = arith.constant 0 : index
    %c0_85 = arith.constant 0 : index
    %269 = vector.load %arg10[%c0_84, %c0_85] : memref<64x32xf32, #tpu.memory_space<vmem>>, vector<64x32xf32>
    %cst_86 = arith.constant dense<0.000000e+00> : vector<16x32xf32>
    %270 = tpu.matmul %268, %269, %cst_86 {dimension_numbers = #tpu.dot_dimension_numbers<[1], [0], [0], [1], [0, 0, 1, 1], [], []>} : vector<16x64xf32>, vector<64x32xf32>, vector<16x32xf32> -> vector<16x32xf32>
    %c0_87 = arith.constant 0 : index
    %c0_88 = arith.constant 0 : index
    %271 = vector.load %arg11[%c0_87, %c0_88] : memref<1x32xf32, #tpu.memory_space<vmem>>, vector<1x32xf32>
    %272 = vector.shape_cast %271 : vector<1x32xf32> to vector<32xf32>
    %273 = vector.shape_cast %272 : vector<32xf32> to vector<1x32xf32>
    %274 = vector.broadcast %273 : vector<1x32xf32> to vector<16x32xf32>
    %275 = arith.addf %270, %274 : vector<16x32xf32>
    %276 = arith.addf %232, %275 : vector<16x32xf32>
    %277 = vector.shape_cast %276 : vector<16x32xf32> to vector<2x8x32xf32>
    %c0_89 = arith.constant 0 : index
    %c0_90 = arith.constant 0 : index
    %c0_91 = arith.constant 0 : index
    %278 = vector.load %arg14[%c0_89, %c0_90, %c0_91] : memref<2x8x32xf32, #tpu.memory_space<vmem>>, vector<2x8x32xf32>
    tpu.vector_store %arg14[%c0_89, %c0_90, %c0_91], %277 {strides = array<i32>} : memref<2x8x32xf32, #tpu.memory_space<vmem>>, vector<2x8x32xf32>,
    return
  }
  func.func @transform_0(%arg0: i32) -> (i32, i32, i32) {
    %c0_i32 = arith.constant 0 : i32
    %c0_i32_0 = arith.constant 0 : i32
    %c0_i32_1 = arith.constant 0 : i32
    return %arg0, %c0_i32, %c0_i32_0 : i32, i32, i32
  }
  func.func @transform_1(%arg0: i32) -> (i32, i32, i32) {
    %c0_i32 = arith.constant 0 : i32
    %c0_i32_0 = arith.constant 0 : i32
    %c0_i32_1 = arith.constant 0 : i32
    return %arg0, %c0_i32, %c0_i32_0 : i32, i32, i32
  }
  func.func @transform_2(%arg0: i32) -> (i32, i32) {
    %c0_i32 = arith.constant 0 : i32
    %c0_i32_0 = arith.constant 0 : i32
    %c0_i32_1 = arith.constant 0 : i32
    return %c0_i32, %c0_i32_0 : i32, i32
  }
  func.func @transform_3(%arg0: i32) -> (i32, i32) {
    %c0_i32 = arith.constant 0 : i32
    %c0_i32_0 = arith.constant 0 : i32
    %c0_i32_1 = arith.constant 0 : i32
    return %c0_i32, %c0_i32_0 : i32, i32
  }
  func.func @transform_4(%arg0: i32) -> (i32, i32) {
    %c0_i32 = arith.constant 0 : i32
    %c0_i32_0 = arith.constant 0 : i32
    %c0_i32_1 = arith.constant 0 : i32
    return %c0_i32, %c0_i32_0 : i32, i32
  }
  func.func @transform_5(%arg0: i32) -> (i32, i32) {
    %c0_i32 = arith.constant 0 : i32
    %c0_i32_0 = arith.constant 0 : i32
    %c0_i32_1 = arith.constant 0 : i32
    return %c0_i32, %c0_i32_0 : i32, i32
  }
  func.func @transform_6(%arg0: i32) -> (i32, i32) {
    %c0_i32 = arith.constant 0 : i32
    %c0_i32_0 = arith.constant 0 : i32
    %c0_i32_1 = arith.constant 0 : i32
    return %c0_i32, %c0_i32_0 : i32, i32
  }
  func.func @transform_7(%arg0: i32) -> (i32, i32) {
    %c0_i32 = arith.constant 0 : i32
    %c0_i32_0 = arith.constant 0 : i32
    %c0_i32_1 = arith.constant 0 : i32
    return %c0_i32, %c0_i32_0 : i32, i32
  }
  func.func @transform_8(%arg0: i32) -> (i32, i32) {
    %c0_i32 = arith.constant 0 : i32
    %c0_i32_0 = arith.constant 0 : i32
    %c0_i32_1 = arith.constant 0 : i32
    return %c0_i32, %c0_i32_0 : i32, i32
  }
  func.func @transform_9(%arg0: i32) -> (i32, i32) {
    %c0_i32 = arith.constant 0 : i32
    %c0_i32_0 = arith.constant 0 : i32
    %c0_i32_1 = arith.constant 0 : i32
    return %c0_i32, %c0_i32_0 : i32, i32
  }
  func.func @transform_10(%arg0: i32) -> (i32, i32) {
    %c0_i32 = arith.constant 0 : i32
    %c0_i32_0 = arith.constant 0 : i32
    %c0_i32_1 = arith.constant 0 : i32
    return %c0_i32, %c0_i32_0 : i32, i32
  }
  func.func @transform_11(%arg0: i32) -> (i32, i32) {
    %c0_i32 = arith.constant 0 : i32
    %c0_i32_0 = arith.constant 0 : i32
    %c0_i32_1 = arith.constant 0 : i32
    return %c0_i32, %c0_i32_0 : i32, i32
  }
  func.func @transform_12(%arg0: i32) -> (i32, i32) {
    %c0_i32 = arith.constant 0 : i32
    %c0_i32_0 = arith.constant 0 : i32
    %c0_i32_1 = arith.constant 0 : i32
    return %c0_i32, %c0_i32_0 : i32, i32
  }
  func.func @transform_13(%arg0: i32) -> (i32, i32, i32) {
    %c0_i32 = arith.constant 0 : i32
    %c0_i32_0 = arith.constant 0 : i32
    %c0_i32_1 = arith.constant 0 : i32
    return %arg0, %c0_i32, %c0_i32_0 : i32, i32, i32
  }
}

</mosaic_0001>

<bundles_post_ra>
// kernel: tpu_custom_call.1
= control target key start
LH: loop header
LB: loop body
LE: loop exit
PB: predicated region body
PF: predicated region fallthrough
CT: control target
= control target key end

     0   :  { %18 = vsyncpa [#allocation3], 0  ;;  %s5086_s0 = inlined_call_operand.hbm [shape: f32[2,8,32], index: 0, kind: input, shape index: {}]   ;;  %s5087_s1 = inlined_call_operand.hbm [shape: f32[2,8,32], index: 1, kind: input, shape index: {}]   ;;  %s5088_s2 = inlined_call_operand.vmem [shape: f32[32,96], index: 2, kind: input, shape index: {}]   ;;  %s5089_s3 = inlined_call_operand.vmem [shape: f32[32,32], index: 3, kind: input, shape index: {}]   ;;  %s5090_s4 = inlined_call_operand.vmem [shape: f32[32,32], index: 4, kind: input, shape index: {}]   ;;  %s5091_s5 = inlined_call_operand.hbm [shape: f32[32,64], index: 5, kind: input, shape index: {}]   ;;  %s5092_s6 = inlined_call_operand.hbm [shape: f32[32,32], index: 6, kind: input, shape index: {}]   ;;  %s5093_s7 = inlined_call_operand.hbm [shape: f32[32,64], index: 7, kind: input, shape index: {}]   ;;  %s5094_s8 = inlined_call_operand.vmem [shape: f32[1,64], index: 8, kind: input, shape index: {}]   ;;  %s5095_s9 = inlined_call_operand.vmem [shape: f32[64,32], index: 9, kind: input, shape index: {}]   ;;  %s5096_s10 = inlined_call_operand.hbm [shape: f32[1,32], index: 10, kind: input, shape index: {}]   ;;  %s5097_s11 = inlined_call_operand.vmem [shape: f32[3,32], index: 11, kind: input, shape index: {}]   ;;  %s5098_s12 = inlined_call_operand.vmem [shape: f32[3,32], index: 12, kind: input, shape index: {}]   ;;  %s5099_s13 = inlined_call_operand.hbm [shape: f32[2,8,32], index: 13, kind: output, shape index: {}]  }
   0x1   :  { %19 = vsyncpa [#allocation6], 0 }
   0x2   :  { %20 = vsyncpa [#allocation9], 0 }
   0x3   :  { %21 = vsyncpa [#allocation12], 0 }
   0x4   :  { %22 = vsyncpa [#allocation4], 0  ;;  %s4405_s25 = smov [#allocation5]   ;;  %s4406_s27 = smov [#allocation8]  }
   0x5   :  { %s40_s26 = sshll.u32 %s4405_s25, 4  ;;  %s70_s28 = sshll.u32 %s4406_s27, 4  ;;  %s41_s26 = int_to_ptr.vmem [resolvable:$true] %s40_s26  ;;  %s4499_s28 = int_to_ptr.vmem [resolvable:$true] %s70_s28 }
   0x6   :  { %s4241_s14 = scalar_lea.hbm %s5087_s1, 256 }
   0x7   :  { %p4242_p0 = scmp.ne.s32.totalorder %s5087_s1, %s4241_s14  ;;  %p4245_p1 = scmp.lt.u32.totalorder %s4241_s14, %s5087_s1 }
   0x9   :  { %p4247_p2 = pnand %p4245_p1, %p4242_p0 }
   0xb   :  { %4250 = shalt.err (!%p4247_p2)
}
   0xc   :  { %s4251_s19 = scalar_lea.vmem %s41_s26, 256  ;;  %p4256_p4 = scmp.lt.s32.totalorder %s41_s26, %s41_s26 }
   0xd   :  { %p4252_p3 = scmp.ne.s32.totalorder %s41_s26, %s4251_s19  ;;  %p4257_p5 = scmp.lt.s32.totalorder %s4251_s19, %s4251_s19 }
   0xf   :  { %p4258_p6 = por %p4257_p5, %p4256_p4 }
  0x11   :  { %p4259_p7 = pnand %p4258_p6, %p4252_p3 }
  0x13   :  { %4262 = shalt.err (!%p4259_p7)
}
  0x14   :  { %s4407_s20 = smov 128   ;;  %s4408_s21 = smov 8  }
  0x15   :  { %46 = dma.hbm_to_vmem [thread:$0]  %s5087_s1, 256, %s41_s26, [#allocation6], %s4407_s20, %s4407_s20, %s4408_s21  }
  0x16   :  { %s4263_s27 = scalar_lea.hbm %s5092_s6, 512 }
  0x17   :  { %p4264_p8 = scmp.ne.s32.totalorder %s5092_s6, %s4263_s27  ;;  %p4267_p9 = scmp.lt.u32.totalorder %s4263_s27, %s5092_s6 }
  0x19   :  { %p4269_p10 = pnand %p4267_p9, %p4264_p8 }
  0x1b   :  { %4272 = shalt.err (!%p4269_p10)
}
  0x1c   :  { %s4273_s16 = scalar_lea.vmem %s4499_s28, 512  ;;  %p4278_p12 = scmp.lt.s32.totalorder %s4499_s28, %s4499_s28 }
  0x1d   :  { %p4274_p11 = scmp.ne.s32.totalorder %s4499_s28, %s4273_s16  ;;  %p4279_p13 = scmp.lt.s32.totalorder %s4273_s16, %s4273_s16 }
  0x1f   :  { %p4280_p0 = por %p4279_p13, %p4278_p12 }
  0x21   :  { %p4281_p1 = pnand %p4280_p0, %p4274_p11 }
  0x23   :  { %4284 = shalt.err (!%p4281_p1)
}
  0x24   :  { %76 = dma.hbm_to_vmem [thread:$0]  %s5092_s6, 512, %s4499_s28, [#allocation9], %s4407_s20, %s4407_s20, %s4408_s21  }
  0x25   :  { %s4409_s17 = smov [#allocation2]   ;;  %s4410_s19 = smov [#allocation7]  }
  0x26   :  { %s28_s18 = sshll.u32 %s4409_s17, 4  ;;  %s58_s22 = sshll.u32 %s4410_s19, 4  ;;  %s29_s18 = int_to_ptr.vmem [resolvable:$true] %s28_s18  ;;  %s4536_s22 = int_to_ptr.vmem [resolvable:$true] %s58_s22 }
  0x27   :  { %s4285_s25 = scalar_lea.hbm %s5086_s0, 256 }
  0x28   :  { %p4286_p2 = scmp.ne.s32.totalorder %s5086_s0, %s4285_s25  ;;  %p4289_p3 = scmp.lt.u32.totalorder %s4285_s25, %s5086_s0 }
  0x2a   :  { %p4291_p4 = pnand %p4289_p3, %p4286_p2 }
  0x2c   :  { %4294 = shalt.err (!%p4291_p4)
}
  0x2d   :  { %s4295_s6 = scalar_lea.vmem %s29_s18, 256  ;;  %p4300_p6 = scmp.lt.s32.totalorder %s29_s18, %s29_s18 }
  0x2e   :  { %p4296_p5 = scmp.ne.s32.totalorder %s29_s18, %s4295_s6  ;;  %p4301_p7 = scmp.lt.s32.totalorder %s4295_s6, %s4295_s6 }
  0x30   :  { %p4302_p8 = por %p4301_p7, %p4300_p6 }
  0x32   :  { %p4303_p9 = pnand %p4302_p8, %p4296_p5 }
  0x34   :  { %4306 = shalt.err (!%p4303_p9)
}
  0x35   :  { %34 = dma.hbm_to_vmem [thread:$0]  %s5086_s0, 256, %s29_s18, [#allocation3], %s4407_s20, %s4407_s20, %s4408_s21  }
  0x36   :  { %s4307_s26 = scalar_lea.hbm %s5091_s5, 512 }
  0x37   :  { %p4308_p10 = scmp.ne.s32.totalorder %s5091_s5, %s4307_s26  ;;  %p4311_p11 = scmp.lt.u32.totalorder %s4307_s26, %s5091_s5 }
  0x39   :  { %p4313_p12 = pnand %p4311_p11, %p4308_p10 }
  0x3b   :  { %4316 = shalt.err (!%p4313_p12)
}
  0x3c   :  { %s4317_s25 = scalar_lea.vmem %s4536_s22, 512  ;;  %p4322_p0 = scmp.lt.s32.totalorder %s4536_s22, %s4536_s22 }
  0x3d   :  { %p4318_p13 = scmp.ne.s32.totalorder %s4536_s22, %s4317_s25  ;;  %p4323_p1 = scmp.lt.s32.totalorder %s4317_s25, %s4317_s25 }
  0x3f   :  { %p4324_p2 = por %p4323_p1, %p4322_p0 }
  0x41   :  { %p4325_p3 = pnand %p4324_p2, %p4318_p13 }
  0x43   :  { %4328 = shalt.err (!%p4325_p3)
}
  0x44   :  { %64 = dma.hbm_to_vmem [thread:$0]  %s5091_s5, 512, %s4536_s22, [#allocation6], %s4407_s20, %s4407_s20, %s4408_s21  }
  0x45   :  { %s4411_s27 = smov [#allocation10]   ;;  %s4412_s30 = smov [#allocation11]  }
  0x46   :  { %s82_s29 = sshll.u32 %s4411_s27, 4  ;;  %s99_s14 = sshll.u32 %s4412_s30, 4  ;;  %s83_s29 = int_to_ptr.vmem [resolvable:$true] %s82_s29  ;;  %s100_s14 = int_to_ptr.vmem [resolvable:$true] %s99_s14 }
  0x47   :  { %s4329_s15 = scalar_lea.hbm %s5093_s7, 512 }
  0x48   :  { %p4330_p4 = scmp.ne.s32.totalorder %s5093_s7, %s4329_s15  ;;  %p4333_p5 = scmp.lt.u32.totalorder %s4329_s15, %s5093_s7 }
  0x4a   :  { %p4335_p6 = pnand %p4333_p5, %p4330_p4 }
  0x4c   :  { %4338 = shalt.err (!%p4335_p6)
}
  0x4d   :  { %s4339_s5 = scalar_lea.vmem %s83_s29, 512  ;;  %p4344_p8 = scmp.lt.s32.totalorder %s83_s29, %s83_s29 }
  0x4e   :  { %p4340_p7 = scmp.ne.s32.totalorder %s83_s29, %s4339_s5  ;;  %p4345_p9 = scmp.lt.s32.totalorder %s4339_s5, %s4339_s5 }
  0x50   :  { %p4346_p10 = por %p4345_p9, %p4344_p8 }
  0x52   :  { %p4347_p11 = pnand %p4346_p10, %p4340_p7 }
  0x54   :  { %4350 = shalt.err (!%p4347_p11)
}
  0x55   :  { %88 = dma.hbm_to_vmem [thread:$0]  %s5093_s7, 512, %s83_s29, [#allocation9], %s4407_s20, %s4407_s20, %s4408_s21  }
  0x56   :  { %s4351_s25 = scalar_lea.hbm %s5096_s10, 16 }
  0x57   :  { %p4352_p12 = scmp.ne.s32.totalorder %s5096_s10, %s4351_s25  ;;  %p4355_p13 = scmp.lt.u32.totalorder %s4351_s25, %s5096_s10 }
  0x59   :  { %p4357_p0 = pnand %p4355_p13, %p4352_p12 }
  0x5b   :  { %4360 = shalt.err (!%p4357_p0)
}
  0x5c   :  { %s4361_s6 = scalar_lea.vmem %s100_s14, 16  ;;  %s4365_s28 = scalar_lea.vmem %s100_s14, 32 }
  0x5d   :  { %p4362_p1 = scmp.ne.s32.totalorder %s100_s14, %s4361_s6  ;;  %p4366_p2 = scmp.lt.s32.totalorder %s100_s14, %s100_s14 }
  0x5e   :  { %p4367_p3 = scmp.lt.s32.totalorder %s4365_s28, %s4361_s6 }
  0x60   :  { %p4368_p4 = por %p4367_p3, %p4366_p2 }
  0x62   :  { %p4369_p5 = pnand %p4368_p4, %p4362_p1 }
  0x64   :  { %4372 = shalt.err (!%p4369_p5)
}
  0x65   :  { %102 = dma.hbm_to_vmem [thread:$0]  %s5096_s10, 16, %s100_s14, [#allocation12]  }
  0x66   :  { %4395 = dma.done.wait [#allocation3], 256  }
  0x67   :  { %4396 = vsyncadd [#allocation3], 4294967040 }
  0x68   :  { %4397 = dma.done.wait [#allocation6], 768  }
  0x69   :  { %4398 = vsyncadd [#allocation6], 4294966528 }
  0x6a   :  { %4399 = dma.done.wait [#allocation9], 1024  }
  0x6b   :  { %4400 = vsyncadd [#allocation9], 4294966272 }
  0x6c   :  { %4401 = dma.done.wait [#allocation12], 16  }
  0x6d   :  { %4402 = vsyncadd [#allocation12], 4294967280  ;;  %vm131_vm0 = vcmask 261120   ;;  %v4600_v0 = vld [vmem:[#allocation2] sm:$0xff]  ;;  %v4602_v1 = vld [vmem:[#allocation2 + $0x8] sm:$0xff]  ;;  %v4413_v46 = vmov 0.0  }
  0x6e   :  { %v132_v2 = vsel %vm131_vm0, %v4600_v0, 0.0  ;;  %v135_v3 = vsel %vm131_vm0, %v4602_v1, 0.0  ;;  %v185_v14 = vld [vmem:[%s5088_s2] sm:$0xff]  ;;  %v186_v15 = vld [vmem:[%s5088_s2 + $0x8] sm:$0xff]  ;;  %v187_v16 = vld [vmem:[%s5088_s2 + $0x10] sm:$0xff]  ;;  %3841 = vmatprep.subr.mxu0 %v4413_v46  ;;  %vm4414_vm5 = vmmov 0  }
  0x6f   :  { %133 = vadd.xlane.f32.xlu0 %v132_v2  ;;  %v4065_v17 = vpack.c.bf16 %v186_v15, %v185_v14  ;;  %v188_v18 = vld [vmem:[%s5088_s2 + $0x18] sm:$0xff]  ;;  %v3640_v37 = vld [vmem:[%s5097_s11] ss:$0 sm:$0xff]  ;;  %3843 = vmatprep.mubr.msk.f32.mxu0 %vm4414_vm5, %v4413_v46  ;;  %s4415_s24 = smov 96   ;;  %vm275_vm6 = vcmask 64512   ;;  %s4416_s25 = smov 64  }
  0x70   :  { %v4069_v19 = vpack.c.bf16 %v188_v18, %v187_v16  ;;  %v3641_v39 = vld [vmem:[%s5098_s12] ss:$0 sm:$0xff]  ;;  %s4417_s0 = smov 88   ;;  %s4418_s18 = smov 120   ;;  %vm1622_vm7 = vcmask 195584   ;;  %vm1619_vm8 = vcmask 130048  }
  0x71   :  { %4066 = vmatprep.subr.bf16.mxu1 %v4065_v17  ;;  %s4419_s27 = smov 56   ;;  %s4420_s30 = smov 80  }
  0x72   :  { %4068 = vmatpush3.bf16.msra.mxu1 %v4065_v17  ;;  %s4421_s6 = smov 112   ;;  %s4422_s28 = smov 48  }
  0x73   :  { %136 = vadd.xlane.f32.xlu0 %v135_v3  ;;  %4070 = vmatprep.subr.bf16.mxu1 %v4069_v19  ;;  %s4423_s7 = smov 72   ;;  %s4424_s29 = smov 104  }
  0x74   :  { %s4425_s10 = smov 40   ;;  %s4426_s14 = smov 16  }
  0x75   :  { %s4427_s19 = smov 24  }
  0x76   :  { %4072 = vmatpush3.bf16.msra.mxu1 %v4069_v19 }
  0x77   :  { %3831 = vmatprep.subr.mxu1 %v4413_v46 }
  0xfc   :  { %v134_v4 = vpop.xlane.xlu0 %133 }
  0xfd   :  { %v139_v5 = vmul.f32 0.03125, %v134_v4 }
  0xff   :  { %v141_v6 = vsub.f32 %v4600_v0, %v139_v5 }
 0x100   :  { %v137_v7 = vpop.xlane.xlu0 %136 }
 0x101   :  { %v140_v8 = vmul.f32 0.03125, %v137_v7  ;;  %v143_v9 = vmul.f32 %v141_v6, %v141_v6 }
 0x103   :  { %v142_v10 = vsub.f32 %v4602_v1, %v140_v8  ;;  %v145_v11 = vsel %vm131_vm0, %v143_v9, 0.0 }
 0x104   :  { %146 = vadd.xlane.f32.xlu1 %v145_v11 }
 0x105   :  { %v144_v12 = vmul.f32 %v142_v10, %v142_v10 }
 0x107   :  { %v148_v13 = vsel %vm131_vm0, %v144_v12, 0.0 }
 0x108   :  { %149 = vadd.xlane.f32.xlu1 %v148_v13 }
 0x191   :  { %v147_v20 = vpop.xlane.xlu1 %146 }
 0x192   :  { %v151_v21 = vmul.f32 0.032258064, %v147_v20 }
 0x194   :  { %4153 = vrsqrt.f32 %v151_v21  ;;  %vm155_vm1 = vcmp.eq.f32.partialorder %v151_v21, inf  ;;  %v158_v26 = vand.u32 2147483648, %v151_v21  ;;  %vm157_vm2 = vcmp.eq.f32.partialorder %v151_v21, 0.0 }
 0x195   :  { %v150_v22 = vpop.xlane.xlu1 %149 }
 0x196   :  { %v152_v23 = vmul.f32 0.032258064, %v150_v22 }
 0x198   :  { %4155 = vrsqrt.f32 %v152_v23  ;;  %vm162_vm3 = vcmp.eq.f32.partialorder %v152_v23, inf  ;;  %v165_v32 = vand.u32 2147483648, %v152_v23  ;;  %vm164_vm4 = vcmp.eq.f32.partialorder %v152_v23, 0.0 }
 0x19e   :  { %v4154_v24 = vpop.eup %4153 }
 0x19f   :  { %v154_v25 = vmul.f32 %v4154_v24, %v151_v21 }
 0x1a1   :  { %v156_v27 = vsel %vm155_vm1, %v151_v21, %v154_v25 }
 0x1a2   :  { %v4156_v28 = vpop.eup %4155  ;;  %v159_v29 = vsel %vm157_vm2, %v158_v26, %v156_v27  ;;  %vm3534_vm2 = vcmask 523264  }
 0x1a3   :  { %v161_v30 = vmul.f32 %v4156_v28, %v152_v23  ;;  %v167_v31 = vadd.f32 1e-06, %v159_v29 }
 0x1a5   :  { %v163_v33 = vsel %vm162_vm3, %v152_v23, %v161_v30  ;;  %4157 = vrcp.f32 %v167_v31 }
 0x1a6   :  { %v166_v34 = vsel %vm164_vm4, %v165_v32, %v163_v33 }
 0x1a7   :  { %v168_v35 = vadd.f32 1e-06, %v166_v34 }
 0x1a9   :  { %4159 = vrcp.f32 %v168_v35 }
 0x1af   :  { %v4158_v36 = vpop.eup %4157 }
 0x1b0   :  { %v171_v38 = vmul.f32 %v4158_v36, %v141_v6 }
 0x1b2   :  { %v177_v40 = vmul.f32 %v3640_v37, %v171_v38 }
 0x1b3   :  { %v4160_v41 = vpop.eup %4159 }
 0x1b4   :  { %v172_v42 = vmul.f32 %v4160_v41, %v142_v10  ;;  %v183_v43 = vadd.f32 %v3641_v39, %v177_v40 }
 0x1b6   :  { %v178_v44 = vmul.f32 %v3640_v37, %v172_v42  ;;  %3828 = vmatprep.mubr.msk.f32.mxu1 %vm131_vm0, %v183_v43 }
 0x1b8   :  { %v184_v45 = vadd.f32 %v3641_v39, %v178_v44 }
 0x1ba   :  { %3829 = vmatmul.mubr.msk.f32.vlgmr.msra.gmra.mrb[0].mxu1 %vm131_vm0, %v184_v45 }
 0x1bb   :  { %3833 = vmatprep.mubr.msk.f32.mxu1 %vm4414_vm5, %v4413_v46 }
 0x28d   :  { %v4638_v47 = vpop.f32.mrb[0].mxu1 }
 0x28e   :  { %352 = vrot.lane.b32.xlu1 %v4638_v47, %s4415_s24  ;;  %v4642_v48 = vpop.f32.mrb[1].mxu1  ;;  %v4657_v52 = vmul.f32 0.35355338, %v4638_v47 }
 0x28f   :  { %273 = vrot.lane.b32.xlu0 %v4642_v48, %s4415_s24  ;;  %v4648_v50 = vmul.f32 0.35355338, %v4642_v48 }
 0x300   :  { %v353_v51 = vpop.permute.xlu1 %352 }
 0x301   :  { %v274_v49 = vpop.permute.xlu0 %273 }
 0x302   :  { %3832 = vmatpush3.xpose.msk.msra.mxu1 %vm275_vm6, %v274_v49 }
 0x303   :  { %3836 = vmatprep.subr.mxu1 %v4413_v46 }
 0x305   :  { %3834 = vmatmul.mubr.msk.f32.vlgmr.msra.gmra.mrb[2].mxu1 %vm275_vm6, %v4648_v50 }
 0x306   :  { %3837 = vmatpush3.xpose.msk.msra.mxu1 %vm275_vm6, %v353_v51  ;;  %3838 = vmatprep.mubr.msk.f32.mxu1 %vm4414_vm5, %v4413_v46 }
 0x307   :  { %3846 = vmatprep.subr.mxu1 %v4413_v46 }
 0x309   :  { %3839 = vmatmul.mubr.msk.f32.vlgmr.msra.gmra.mrb[4].mxu1 %vm275_vm6, %v4657_v52 }
 0x30a   :  { %3848 = vmatprep.mubr.msk.f32.mxu1 %vm4414_vm5, %v4413_v46 }
 0x3d8   :  { %v347_v53 = vpop.f32.mrb[2].mxu1 }
 0x3d9   :  { %v3835_v54 = vpop.f32.mrb[3].mxu1  ;;  %v429_v55 = vsel %vm275_vm6, %v347_v53, -inf }
 0x3da   :  { %430 = vmax.xlane.f32.xlu1 %v429_v55 }
 0x3dc   :  { %v425_v56 = vpop.f32.mrb[4].mxu1 }
 0x3dd   :  { %v3840_v57 = vpop.f32.mrb[5].mxu1  ;;  %v432_v58 = vsel %vm275_vm6, %v425_v56, -inf }
 0x3de   :  { %433 = vmax.xlane.f32.xlu0 %v432_v58 }
 0x3eb   :  { %527 = vrot.lane.b32.xlu1 %v4638_v47, %s4416_s25 }
 0x3ef   :  { %605 = vrot.lane.b32.xlu1 %v4642_v48, %s4417_s0 }
 0x3f3   :  { %683 = vrot.lane.b32.xlu1 %v4638_v47, %s4417_s0 }
 0x3f4   :  { %451 = vrot.lane.b32.xlu0 %v4642_v48, %s4416_s25 }
 0x467   :  { %v431_v59 = vpop.xlane.xlu1 %430 }
 0x468   :  { %v435_v60 = vsub.f32 %v347_v53, %v431_v59 }
 0x46a   :  { %v437_v61 = vmul.f32 1.442695, %v435_v60 }
 0x46b   :  { %v528_v62 = vpop.permute.xlu1 %527  ;;  %v434_v63 = vpop.xlane.xlu0 %433 }
 0x46c   :  { %4161 = vpow2.f32 %v437_v61  ;;  %v436_v2 = vsub.f32 %v425_v56, %v434_v63  ;;  %3847 = vmatpush3.msra.mxu1 %v528_v62 }
 0x46d   :  { %3856 = vmatprep.subr.mxu1 %v4413_v46 }
 0x46e   :  { %v439_v3 = vmul.f32 1.442695, %v436_v2 }
 0x46f   :  { %v452_v4 = vpop.permute.xlu0 %451  ;;  %v606_v9 = vpop.permute.xlu1 %605 }
 0x470   :  { %4163 = vpow2.f32 %v439_v3  ;;  %3842 = vmatpush3.msra.mxu0 %v452_v4 }
 0x471   :  { %3851 = vmatprep.subr.mxu0 %v4413_v46 }
 0x473   :  { %v684_v10 = vpop.permute.xlu1 %683 }
 0x476   :  { %v4162_v5 = vpop.eup %4161 }
 0x477   :  { %v441_v6 = vsel %vm275_vm6, %v4162_v5, 0.0 }
 0x478   :  { %442 = vadd.xlane.f32.xlu0 %v441_v6 }
 0x47a   :  { %v4164_v7 = vpop.eup %4163 }
 0x47b   :  { %v444_v8 = vsel %vm275_vm6, %v4164_v7, 0.0 }
 0x47c   :  { %445 = vadd.xlane.f32.xlu1 %v444_v8 }
 0x48d   :  { %681 = vrot.lane.b32.xlu1 %v4657_v52, %s4418_s18 }
 0x48e   :  { %603 = vrot.lane.b32.xlu0 %v4648_v50, %s4418_s18 }
 0x505   :  { %v443_v11 = vpop.xlane.xlu0 %442 }
 0x506   :  { %4165 = vrcp.f32 %v443_v11 }
 0x509   :  { %v446_v12 = vpop.xlane.xlu1 %445  ;;  %v604_v17 = vpop.permute.xlu0 %603 }
 0x50a   :  { %4167 = vrcp.f32 %v446_v12 }
 0x50d   :  { %v682_v18 = vpop.permute.xlu1 %681 }
 0x510   :  { %v4166_v13 = vpop.eup %4165 }
 0x511   :  { %v449_v14 = vmul.f32 %v4166_v13, %v4162_v5 }
 0x513   :  { %3844 = vmatmul.mubr.msk.f32.vlgmr.msra.gmra.mrb[0].mxu0 %vm275_vm6, %v449_v14 }
 0x514   :  { %v4168_v15 = vpop.eup %4167  ;;  %3852 = vmatpush3.xpose.msk.msra.mxu0 %vm275_vm6, %v606_v9  ;;  %3853 = vmatprep.mubr.msk.f32.mxu0 %vm4414_vm5, %v4413_v46 }
 0x515   :  { %v450_v16 = vmul.f32 %v4168_v15, %v4164_v7  ;;  %3861 = vmatprep.subr.mxu0 %v4413_v46 }
 0x517   :  { %3849 = vmatmul.mubr.msk.f32.vlgmr.msra.gmra.mrb[6].mxu1 %vm275_vm6, %v450_v16  ;;  %3854 = vmatmul.mubr.msk.f32.vlgmr.msra.gmra.mrb[2].mxu0 %vm275_vm6, %v604_v17 }
 0x518   :  { %3857 = vmatpush3.xpose.msk.msra.mxu1 %vm275_vm6, %v684_v10  ;;  %3858 = vmatprep.mubr.msk.f32.mxu1 %vm4414_vm5, %v4413_v46 }
 0x519   :  { %3866 = vmatprep.subr.mxu1 %v4413_v46  ;;  %3863 = vmatprep.mubr.msk.f32.mxu0 %vm4414_vm5, %v4413_v46 }
 0x51b   :  { %3859 = vmatmul.mubr.msk.f32.vlgmr.msra.gmra.mrb[8].mxu1 %vm275_vm6, %v682_v18 }
 0x51c   :  { %3868 = vmatprep.mubr.msk.f32.mxu1 %vm4414_vm5, %v4413_v46 }
 0x5e6   :  { %v4696_v19 = vpop.f32.mrb[0].mxu0 }
 0x5e7   :  { %v3845_v20 = vpop.f32.mrb[1].mxu0 }
 0x5ea   :  { %v4698_v21 = vpop.f32.mrb[6].mxu1  ;;  %v677_v22 = vpop.f32.mrb[2].mxu0 }
 0x5eb   :  { %v3850_v23 = vpop.f32.mrb[7].mxu1  ;;  %v3855_v24 = vpop.f32.mrb[3].mxu0  ;;  %v759_v25 = vsel %vm275_vm6, %v677_v22, -inf }
 0x5ec   :  { %760 = vmax.xlane.f32.xlu0 %v759_v25 }
 0x5ee   :  { %v755_v26 = vpop.f32.mrb[8].mxu1 }
 0x5ef   :  { %v3860_v27 = vpop.f32.mrb[9].mxu1  ;;  %v762_v28 = vsel %vm275_vm6, %v755_v26, -inf }
 0x5f0   :  { %763 = vmax.xlane.f32.xlu1 %v762_v28 }
 0x601   :  { %857 = vrot.lane.b32.xlu1 %v4638_v47, %s4419_s27 }
 0x602   :  { %781 = vrot.lane.b32.xlu0 %v4642_v48, %s4419_s27 }
 0x605   :  { %935 = vrot.lane.b32.xlu1 %v4642_v48, %s4420_s30 }
 0x609   :  { %1013 = vrot.lane.b32.xlu1 %v4638_v47, %s4420_s30 }
 0x60d   :  { %1011 = vrot.lane.b32.xlu1 %v4657_v52, %s4421_s6 }
 0x679   :  { %v761_v29 = vpop.xlane.xlu0 %760 }
 0x67a   :  { %v765_v30 = vsub.f32 %v677_v22, %v761_v29 }
 0x67c   :  { %v767_v31 = vmul.f32 1.442695, %v765_v30 }
 0x67d   :  { %v782_v32 = vpop.permute.xlu0 %781  ;;  %v764_v33 = vpop.xlane.xlu1 %763 }
 0x67e   :  { %4169 = vpow2.f32 %v767_v31  ;;  %v766_v34 = vsub.f32 %v755_v26, %v764_v33  ;;  %3862 = vmatpush3.msra.mxu0 %v782_v32 }
 0x67f   :  { %3871 = vmatprep.subr.mxu0 %v4413_v46 }
 0x680   :  { %v769_v35 = vmul.f32 1.442695, %v766_v34 }
 0x681   :  { %v858_v36 = vpop.permute.xlu1 %857 }
 0x682   :  { %4171 = vpow2.f32 %v769_v35  ;;  %3867 = vmatpush3.msra.mxu1 %v858_v36 }
 0x683   :  { %3876 = vmatprep.subr.mxu1 %v4413_v46 }
 0x685   :  { %v936_v43 = vpop.permute.xlu1 %935 }
 0x688   :  { %v4170_v37 = vpop.eup %4169 }
 0x689   :  { %v771_v38 = vsel %vm275_vm6, %v4170_v37, 0.0  ;;  %v1014_v51 = vpop.permute.xlu1 %1013 }
 0x68a   :  { %772 = vadd.xlane.f32.xlu0 %v771_v38 }
 0x68c   :  { %v4172_v39 = vpop.eup %4171 }
 0x68d   :  { %v774_v40 = vsel %vm275_vm6, %v4172_v39, 0.0  ;;  %v1012_v55 = vpop.permute.xlu1 %1011 }
 0x68e   :  { %775 = vadd.xlane.f32.xlu0 %v774_v40 }
 0x6a4   :  { %933 = vrot.lane.b32.xlu0 %v4648_v50, %s4421_s6 }
 0x717   :  { %v773_v41 = vpop.xlane.xlu0 %772 }
 0x718   :  { %4173 = vrcp.f32 %v773_v41 }
 0x71b   :  { %v776_v42 = vpop.xlane.xlu0 %775 }
 0x71c   :  { %4175 = vrcp.f32 %v776_v42 }
 0x71f   :  { %v934_v54 = vpop.permute.xlu0 %933 }
 0x722   :  { %v4174_v44 = vpop.eup %4173 }
 0x723   :  { %v779_v45 = vmul.f32 %v4174_v44, %v4170_v37 }
 0x725   :  { %3864 = vmatmul.mubr.msk.f32.vlgmr.msra.gmra.mrb[4].mxu0 %vm275_vm6, %v779_v45 }
 0x726   :  { %v4176_v49 = vpop.eup %4175  ;;  %3872 = vmatpush3.xpose.msk.msra.mxu0 %vm275_vm6, %v936_v43  ;;  %3873 = vmatprep.mubr.msk.f32.mxu0 %vm4414_vm5, %v4413_v46 }
 0x727   :  { %v780_v53 = vmul.f32 %v4176_v49, %v4172_v39  ;;  %3881 = vmatprep.subr.mxu0 %v4413_v46 }
 0x729   :  { %3869 = vmatmul.mubr.msk.f32.vlgmr.msra.gmra.mrb[10].mxu1 %vm275_vm6, %v780_v53  ;;  %3874 = vmatmul.mubr.msk.f32.vlgmr.msra.gmra.mrb[6].mxu0 %vm275_vm6, %v934_v54 }
 0x72a   :  { %3877 = vmatpush3.xpose.msk.msra.mxu1 %vm275_vm6, %v1014_v51  ;;  %3878 = vmatprep.mubr.msk.f32.mxu1 %vm4414_vm5, %v4413_v46 }
 0x72b   :  { %3886 = vmatprep.subr.mxu1 %v4413_v46  ;;  %3883 = vmatprep.mubr.msk.f32.mxu0 %vm4414_vm5, %v4413_v46 }
 0x72d   :  { %3879 = vmatmul.mubr.msk.f32.vlgmr.msra.gmra.mrb[12].mxu1 %vm275_vm6, %v1012_v55 }
 0x72e   :  { %3888 = vmatprep.mubr.msk.f32.mxu1 %vm4414_vm5, %v4413_v46 }
 0x7f8   :  { %v4732_v56 = vpop.f32.mrb[4].mxu0 }
 0x7f9   :  { %v3865_v57 = vpop.f32.mrb[5].mxu0 }
 0x7fc   :  { %v4734_v58 = vpop.f32.mrb[10].mxu1  ;;  %v1007_v59 = vpop.f32.mrb[6].mxu0 }
 0x7fd   :  { %v3870_v60 = vpop.f32.mrb[11].mxu1  ;;  %v3875_v61 = vpop.f32.mrb[7].mxu0  ;;  %v1089_v62 = vsel %vm275_vm6, %v1007_v59, -inf }
 0x7fe   :  { %1090 = vmax.xlane.f32.xlu0 %v1089_v62  ;;  %v1627_v60 = vld [vmem:[%s5089_s3 + $0x10] sm:$0xff]  ;;  %v1628_v61 = vld [vmem:[%s5089_s3 + $0x18] sm:$0xff] }
 0x7ff   :  { %v4077_v62 = vpack.c.bf16 %v1628_v61, %v1627_v60 }
 0x800   :  { %v1085_v63 = vpop.f32.mrb[12].mxu1 }
 0x801   :  { %v3880_v2 = vpop.f32.mrb[13].mxu1  ;;  %v1092_v3 = vsel %vm275_vm6, %v1085_v63, -inf }
 0x802   :  { %1093 = vmax.xlane.f32.xlu1 %v1092_v3 }
 0x813   :  { %1187 = vrot.lane.b32.xlu1 %v4638_v47, %s4422_s28 }
 0x814   :  { %1111 = vrot.lane.b32.xlu0 %v4642_v48, %s4422_s28 }
 0x817   :  { %1265 = vrot.lane.b32.xlu1 %v4642_v48, %s4423_s7 }
 0x81b   :  { %1343 = vrot.lane.b32.xlu1 %v4638_v47, %s4423_s7 }
 0x81f   :  { %1341 = vrot.lane.b32.xlu1 %v4657_v52, %s4424_s29 }
 0x88b   :  { %v1091_v4 = vpop.xlane.xlu0 %1090 }
 0x88c   :  { %v1095_v5 = vsub.f32 %v1007_v59, %v1091_v4 }
 0x88e   :  { %v1097_v6 = vmul.f32 1.442695, %v1095_v5 }
 0x88f   :  { %v1112_v7 = vpop.permute.xlu0 %1111  ;;  %v1094_v8 = vpop.xlane.xlu1 %1093 }
 0x890   :  { %4177 = vpow2.f32 %v1097_v6  ;;  %v1096_v9 = vsub.f32 %v1085_v63, %v1094_v8  ;;  %3882 = vmatpush3.msra.mxu0 %v1112_v7 }
 0x891   :  { %3891 = vmatprep.subr.mxu0 %v4413_v46 }
 0x892   :  { %v1099_v10 = vmul.f32 1.442695, %v1096_v9 }
 0x893   :  { %v1188_v11 = vpop.permute.xlu1 %1187 }
 0x894   :  { %4179 = vpow2.f32 %v1099_v10  ;;  %3887 = vmatpush3.msra.mxu1 %v1188_v11 }
 0x895   :  { %3896 = vmatprep.subr.mxu1 %v4413_v46 }
 0x897   :  { %v1266_v17 = vpop.permute.xlu1 %1265 }
 0x89a   :  { %v4178_v12 = vpop.eup %4177 }
 0x89b   :  { %v1101_v13 = vsel %vm275_vm6, %v4178_v12, 0.0  ;;  %v1344_v23 = vpop.permute.xlu1 %1343 }
 0x89c   :  { %1102 = vadd.xlane.f32.xlu0 %v1101_v13 }
 0x89e   :  { %v4180_v52 = vpop.eup %4179 }
 0x89f   :  { %v1104_v14 = vsel %vm275_vm6, %v4180_v52, 0.0  ;;  %v1342_v25 = vpop.permute.xlu1 %1341 }
 0x8a0   :  { %1105 = vadd.xlane.f32.xlu0 %v1104_v14 }
 0x8b6   :  { %1263 = vrot.lane.b32.xlu0 %v4648_v50, %s4424_s29 }
 0x929   :  { %v1103_v15 = vpop.xlane.xlu0 %1102 }
 0x92a   :  { %4181 = vrcp.f32 %v1103_v15 }
 0x92d   :  { %v1106_v16 = vpop.xlane.xlu0 %1105 }
 0x92e   :  { %4183 = vrcp.f32 %v1106_v16 }
 0x931   :  { %v1264_v50 = vpop.permute.xlu0 %1263 }
 0x934   :  { %v4182_v18 = vpop.eup %4181 }
 0x935   :  { %v1109_v20 = vmul.f32 %v4182_v18, %v4178_v12 }
 0x937   :  { %3884 = vmatmul.mubr.msk.f32.vlgmr.msra.gmra.mrb[8].mxu0 %vm275_vm6, %v1109_v20 }
 0x938   :  { %v4184_v22 = vpop.eup %4183  ;;  %3892 = vmatpush3.xpose.msk.msra.mxu0 %vm275_vm6, %v1266_v17  ;;  %3893 = vmatprep.mubr.msk.f32.mxu0 %vm4414_vm5, %v4413_v46 }
 0x939   :  { %v1110_v24 = vmul.f32 %v4184_v22, %v4180_v52  ;;  %3901 = vmatprep.subr.mxu0 %v4413_v46 }
 0x93b   :  { %3889 = vmatmul.mubr.msk.f32.vlgmr.msra.gmra.mrb[14].mxu1 %vm275_vm6, %v1110_v24  ;;  %3894 = vmatmul.mubr.msk.f32.vlgmr.msra.gmra.mrb[10].mxu0 %vm275_vm6, %v1264_v50 }
 0x93c   :  { %3897 = vmatpush3.xpose.msk.msra.mxu1 %vm275_vm6, %v1344_v23  ;;  %3898 = vmatprep.mubr.msk.f32.mxu1 %vm4414_vm5, %v4413_v46 }
 0x93d   :  { %3906 = vmatprep.subr.mxu1 %v4413_v46  ;;  %3903 = vmatprep.mubr.msk.f32.mxu0 %vm4414_vm5, %v4413_v46 }
 0x93f   :  { %3899 = vmatmul.mubr.msk.f32.vlgmr.msra.gmra.mrb[16].mxu1 %vm275_vm6, %v1342_v25 }
 0x940   :  { %3908 = vmatprep.mubr.msk.f32.mxu1 %vm4414_vm5, %v4413_v46 }
 0xa0a   :  { %v1183_v26 = vpop.f32.mrb[8].mxu0 }
 0xa0b   :  { %v3885_v27 = vpop.f32.mrb[9].mxu0 }
 0xa0e   :  { %v1259_v28 = vpop.f32.mrb[14].mxu1  ;;  %v1337_v29 = vpop.f32.mrb[10].mxu0 }
 0xa0f   :  { %v3890_v30 = vpop.f32.mrb[15].mxu1  ;;  %v3895_v31 = vpop.f32.mrb[11].mxu0  ;;  %v1419_v32 = vsel %vm275_vm6, %v1337_v29, -inf }
 0xa10   :  { %1420 = vmax.xlane.f32.xlu0 %v1419_v32  ;;  %v1852_v30 = vld [vmem:[#allocation7 + $0x8] sm:$0xff]  ;;  %v1766_v31 = vld [vmem:[%s5090_s4] sm:$0xff] }
 0xa12   :  { %v1415_v33 = vpop.f32.mrb[16].mxu1 }
 0xa13   :  { %v3900_v34 = vpop.f32.mrb[17].mxu1  ;;  %v1422_v35 = vsel %vm275_vm6, %v1415_v33, -inf }
 0xa14   :  { %1423 = vmax.xlane.f32.xlu1 %v1422_v35  ;;  %v1853_v34 = vld [vmem:[#allocation7 + $0x10] sm:$0xff]  ;;  %v1854_v35 = vld [vmem:[#allocation7 + $0x18] sm:$0xff] }
 0xa25   :  { %1517 = vrot.lane.b32.xlu1 %v4638_v47, %s4425_s10 }
 0xa29   :  { %1595 = vrot.lane.b32.xlu1 %v4732_v56, %s4408_s21 }
 0xa2d   :  { %1597 = vrot.lane.b32.xlu1 %v4734_v58, %s4408_s21  ;;  %v1626_v58 = vld [vmem:[%s5089_s3 + $0x8] sm:$0xff] }
 0xa31   :  { %1605 = vrot.lane.b32.xlu1 %v1259_v28, %s4426_s14 }
 0xa9d   :  { %v1421_v36 = vpop.xlane.xlu0 %1420 }
 0xa9e   :  { %v1425_v37 = vsub.f32 %v1337_v29, %v1421_v36  ;;  %v1851_v29 = vld [vmem:[#allocation7] sm:$0xff] }
 0xa9f   :  { %v4089_v32 = vpack.c.bf16 %v1852_v30, %v1851_v29 }
 0xaa0   :  { %v1427_v38 = vmul.f32 1.442695, %v1425_v37  ;;  %v4093_v37 = vpack.c.bf16 %v1854_v35, %v1853_v34 }
 0xaa1   :  { %v1424_v39 = vpop.xlane.xlu1 %1423 }
 0xaa2   :  { %4185 = vpow2.f32 %v1427_v38  ;;  %v1426_v40 = vsub.f32 %v1415_v33, %v1424_v39  ;;  %v1767_v33 = vld [vmem:[%s5090_s4 + $0x8] sm:$0xff]  ;;  %v1768_v38 = vld [vmem:[%s5090_s4 + $0x10] sm:$0xff]  ;;  %v1769_v39 = vld [vmem:[%s5090_s4 + $0x18] sm:$0xff] }
 0xaa3   :  { %v4081_v36 = vpack.c.bf16 %v1767_v33, %v1766_v31 }
 0xaa4   :  { %v1429_v41 = vmul.f32 1.442695, %v1426_v40  ;;  %v4085_v40 = vpack.c.bf16 %v1769_v39, %v1768_v38 }
 0xaa5   :  { %v1518_v42 = vpop.permute.xlu1 %1517 }
 0xaa6   :  { %4187 = vpow2.f32 %v1429_v41  ;;  %3907 = vmatpush3.msra.mxu1 %v1518_v42  ;;  %v127_v41 = vld [vmem:[#allocation5] sm:$0xff]  ;;  %v128_v42 = vld [vmem:[#allocation5 + $0x8] sm:$0xff] }
 0xaa7   :  { %4082 = vmatprep.subr.bf16.mxu1 %v4081_v36 }
 0xaa9   :  { %v1596_v5 = vpop.permute.xlu1 %1595 }
 0xaaa   :  { %v1617_v8 = vsel %vm275_vm6, %v4696_v19, %v1596_v5 }
 0xaac   :  { %v4186_v47 = vpop.eup %4185 }
 0xaad   :  { %v1431_v43 = vsel %vm275_vm6, %v4186_v47, 0.0  ;;  %v1598_v6 = vpop.permute.xlu1 %1597 }
 0xaae   :  { %1432 = vadd.xlane.f32.xlu0 %v1431_v43  ;;  %v1618_v13 = vsel %vm275_vm6, %v4698_v21, %v1598_v6 }
 0xab0   :  { %v4188_v44 = vpop.eup %4187 }
 0xab1   :  { %v1434_v45 = vsel %vm275_vm6, %v4188_v44, 0.0  ;;  %v1606_v9 = vpop.permute.xlu1 %1605 }
 0xab2   :  { %1435 = vadd.xlane.f32.xlu0 %v1434_v45  ;;  %v1621_v52 = vsel %vm1619_vm8, %v1618_v13, %v1606_v9 }
 0xac8   :  { %1441 = vrot.lane.b32.xlu0 %v4642_v48, %s4425_s10  ;;  %v1625_v48 = vld [vmem:[%s5089_s3] sm:$0xff] }
 0xac9   :  { %v4073_v59 = vpack.c.bf16 %v1626_v58, %v1625_v48 }
 0xacc   :  { %1603 = vrot.lane.b32.xlu0 %v1183_v26, %s4426_s14 }
 0xb3b   :  { %v1433_v49 = vpop.xlane.xlu0 %1432 }
 0xb3c   :  { %4189 = vrcp.f32 %v1433_v49 }
 0xb3f   :  { %v1436_v51 = vpop.xlane.xlu0 %1435 }
 0xb40   :  { %4191 = vrcp.f32 %v1436_v51 }
 0xb43   :  { %v1442_v53 = vpop.permute.xlu0 %1441 }
 0xb44   :  { %3902 = vmatpush3.msra.mxu0 %v1442_v53 }
 0xb45   :  { %4074 = vmatprep.subr.bf16.mxu0 %v4073_v59 }
 0xb46   :  { %v4190_v54 = vpop.eup %4189 }
 0xb47   :  { %v1439_v55 = vmul.f32 %v4190_v54, %v4186_v47  ;;  %v1604_v7 = vpop.permute.xlu0 %1603 }
 0xb48   :  { %v1620_v10 = vsel %vm1619_vm8, %v1617_v8, %v1604_v7 }
 0xb49   :  { %3904 = vmatmul.mubr.msk.f32.vlgmr.msra.gmra.mrb[12].mxu0 %vm275_vm6, %v1439_v55 }
 0xb4a   :  { %v4192_v56 = vpop.eup %4191  ;;  %4076 = vmatpush3.bf16.msra.mxu0 %v4073_v59 }
 0xb4b   :  { %v1440_v57 = vmul.f32 %v4192_v56, %v4188_v44  ;;  %4078 = vmatprep.subr.bf16.mxu0 %v4077_v62 }
 0xb4d   :  { %3909 = vmatmul.mubr.msk.f32.vlgmr.msra.gmra.mrb[18].mxu1 %vm275_vm6, %v1440_v57 }
 0xb4e   :  { %4080 = vmatpush3.bf16.msra.mxu0 %v4077_v62  ;;  %4084 = vmatpush3.bf16.msra.mxu1 %v4081_v36 }
 0xb4f   :  { %4090 = vmatprep.subr.bf16.mxu0 %v4089_v32  ;;  %4086 = vmatprep.subr.bf16.mxu1 %v4085_v40 }
 0xb52   :  { %4088 = vmatpush3.bf16.msra.mxu1 %v4085_v40 }
 0xb53   :  { %3944 = vmatprep.subr.mxu1 %v4413_v46 }
 0xc1c   :  { %v1513_v63 = vpop.f32.mrb[12].mxu0 }
 0xc1d   :  { %1611 = vrot.lane.b32.xlu0 %v1513_v63, %s4427_s19  ;;  %v3905_v2 = vpop.f32.mrb[13].mxu0  ;;  %v3670_v63 = vld [vmem:[%s5097_s11 + $0x1] ss:$0 sm:$0xff] }
 0xc20   :  { %v1589_v3 = vpop.f32.mrb[18].mxu1 }
 0xc21   :  { %1613 = vrot.lane.b32.xlu1 %v1589_v3, %s4427_s19  ;;  %v3910_v4 = vpop.f32.mrb[19].mxu1  ;;  %v3671_v3 = vld [vmem:[%s5098_s12 + $0x1] ss:$0 sm:$0xff] }
 0xc8f   :  { %v1612_v11 = vpop.permute.xlu0 %1611 }
 0xc90   :  { %v1623_v12 = vsel %vm1622_vm7, %v1620_v10, %v1612_v11 }
 0xc91   :  { %3919 = vmatprep.mubr.msk.f32.mxu0 %vm131_vm0, %v1623_v12 }
 0xc93   :  { %v1614_v14 = vpop.permute.xlu1 %1613 }
 0xc94   :  { %v1624_v15 = vsel %vm1622_vm7, %v1621_v52, %v1614_v14 }
 0xc95   :  { %3920 = vmatmul.mubr.msk.f32.vlgmr.msra.gmra.mrb[14].mxu0 %vm131_vm0, %v1624_v15 }
 0xc96   :  { %4092 = vmatpush3.bf16.msra.mxu0 %v4089_v32  ;;  %3941 = vmatprep.mubr.msk.f32.mxu0 %vm131_vm0, %v127_v41 }
 0xc97   :  { %4094 = vmatprep.subr.bf16.mxu0 %v4093_v37 }
 0xc9a   :  { %4096 = vmatpush3.bf16.msra.mxu0 %v4093_v37 }
 0xc9b   :  { %3954 = vmatprep.subr.mxu0 %v4413_v46 }
 0xc9d   :  { %3942 = vmatmul.mubr.msk.f32.vlgmr.msra.gmra.mrb[16].mxu0 %vm131_vm0, %v128_v42 }
 0xc9e   :  { %3956 = vmatprep.mubr.msk.f32.mxu0 %vm4414_vm5, %v4413_v46 }
 0xd68   :  { %v3921_v19 = vpop.f32.mrb[14].mxu0 }
 0xd69   :  { %v4807_v16 = vadd.f32 %v3921_v19, %v4602_v1  ;;  %v1701_v17 = vpop.f32.mrb[15].mxu0 }
 0xd6a   :  { %v4810_v18 = vadd.f32 %v1701_v17, %v4600_v0 }
 0xd6b   :  { %v1717_v20 = vsel %vm131_vm0, %v4807_v16, 0.0 }
 0xd6c   :  { %1718 = vadd.xlane.f32.xlu1 %v1717_v20  ;;  %v1714_v21 = vsel %vm131_vm0, %v4810_v18, 0.0 }
 0xd6d   :  { %1715 = vadd.xlane.f32.xlu0 %v1714_v21 }
 0xd70   :  { %v4853_v10 = vpop.f32.mrb[16].mxu0 }
 0xd71   :  { %v4855_v11 = vpop.f32.mrb[17].mxu0 }
 0xdf9   :  { %v1719_v22 = vpop.xlane.xlu1 %1718 }
 0xdfa   :  { %v1721_v23 = vmul.f32 0.03125, %v1719_v22  ;;  %v1716_v24 = vpop.xlane.xlu0 %1715 }
 0xdfb   :  { %v1720_v50 = vmul.f32 0.03125, %v1716_v24 }
 0xdfc   :  { %v4817_v25 = vsub.f32 %v4807_v16, %v1721_v23 }
 0xdfd   :  { %v1722_v1 = vsub.f32 %v4810_v18, %v1720_v50 }
 0xdfe   :  { %v1725_v27 = vmul.f32 %v4817_v25, %v4817_v25 }
 0xdff   :  { %v1724_v26 = vmul.f32 %v1722_v1, %v1722_v1 }
 0xe00   :  { %v1729_v28 = vsel %vm131_vm0, %v1725_v27, 0.0 }
 0xe01   :  { %v1726_v0 = vsel %vm131_vm0, %v1724_v26, 0.0 }
 0xe02   :  { %1727 = vadd.xlane.f32.xlu0 %v1726_v0 }
 0xe06   :  { %1730 = vadd.xlane.f32.xlu0 %v1729_v28 }
 0xe8f   :  { %v1728_v47 = vpop.xlane.xlu0 %1727 }
 0xe90   :  { %v1732_v43 = vmul.f32 0.032258064, %v1728_v47 }
 0xe92   :  { %4193 = vrsqrt.f32 %v1732_v43  ;;  %vm1736_vm9 = vcmp.eq.f32.partialorder %v1732_v43, inf  ;;  %v1739_v53 = vand.u32 2147483648, %v1732_v43  ;;  %vm1738_vm10 = vcmp.eq.f32.partialorder %v1732_v43, 0.0 }
 0xe93   :  { %v1731_v44 = vpop.xlane.xlu0 %1730 }
 0xe94   :  { %v1733_v45 = vmul.f32 0.032258064, %v1731_v44 }
 0xe96   :  { %4195 = vrsqrt.f32 %v1733_v45  ;;  %vm1743_vm11 = vcmp.eq.f32.partialorder %v1733_v45, inf  ;;  %v1746_v58 = vand.u32 2147483648, %v1733_v45  ;;  %vm1745_vm12 = vcmp.eq.f32.partialorder %v1733_v45, 0.0 }
 0xe9c   :  { %v4194_v49 = vpop.eup %4193 }
 0xe9d   :  { %v1735_v51 = vmul.f32 %v4194_v49, %v1732_v43 }
 0xe9f   :  { %v1737_v54 = vsel %vm1736_vm9, %v1732_v43, %v1735_v51 }
 0xea0   :  { %v4196_v55 = vpop.eup %4195  ;;  %v1740_v56 = vsel %vm1738_vm10, %v1739_v53, %v1737_v54 }
 0xea1   :  { %v1748_v57 = vadd.f32 1e-06, %v1740_v56  ;;  %v1742_v48 = vmul.f32 %v4196_v55, %v1733_v45 }
 0xea3   :  { %4197 = vrcp.f32 %v1748_v57  ;;  %v1744_v59 = vsel %vm1743_vm11, %v1733_v45, %v1742_v48 }
 0xea4   :  { %v1747_v60 = vsel %vm1745_vm12, %v1746_v58, %v1744_v59 }
 0xea5   :  { %v1749_v61 = vadd.f32 1e-06, %v1747_v60 }
 0xea7   :  { %4199 = vrcp.f32 %v1749_v61 }
 0xead   :  { %v4198_v62 = vpop.eup %4197 }
 0xeae   :  { %v1752_v2 = vmul.f32 %v4198_v62, %v1722_v1 }
 0xeb0   :  { %v1758_v4 = vmul.f32 %v3670_v63, %v1752_v2 }
 0xeb1   :  { %v4200_v5 = vpop.eup %4199 }
 0xeb2   :  { %v1753_v6 = vmul.f32 %v4200_v5, %v4817_v25  ;;  %v1764_v7 = vadd.f32 %v3671_v3, %v1758_v4 }
 0xeb4   :  { %v1759_v8 = vmul.f32 %v3670_v63, %v1753_v6  ;;  %3930 = vmatprep.mubr.msk.f32.mxu1 %vm131_vm0, %v1764_v7 }
 0xeb6   :  { %v1765_v9 = vadd.f32 %v3671_v3, %v1759_v8 }
 0xeb8   :  { %3931 = vmatmul.mubr.msk.f32.vlgmr.msra.gmra.mrb[20].mxu1 %vm131_vm0, %v1765_v9 }
 0xeb9   :  { %3946 = vmatprep.mubr.msk.f32.mxu1 %vm4414_vm5, %v4413_v46  ;;  %3945 = vmatpush3.xpose.msk.msra.mxu1 %vm275_vm6, %v4855_v11 }
 0xeba   :  { %3949 = vmatprep.subr.mxu1 %v4413_v46 }
 0xf8b   :  { %v3932_v12 = vpop.f32.mrb[20].mxu1 }
 0xf8c   :  { %v1842_v13 = vpop.f32.mrb[21].mxu1  ;;  %v4868_v14 = vmul.f32 0.35355338, %v3932_v12 }
 0xf8d   :  { %v4860_v52 = vmul.f32 0.35355338, %v1842_v13 }
 0xf8f   :  { %3947 = vmatmul.mubr.msk.f32.vlgmr.msra.gmra.mrb[22].mxu1 %vm275_vm6, %v4860_v52 }
 0xf90   :  { %3950 = vmatpush3.xpose.msk.msra.mxu1 %vm275_vm6, %v4853_v10  ;;  %3951 = vmatprep.mubr.msk.f32.mxu1 %vm4414_vm5, %v4413_v46 }
 0xf91   :  { %3959 = vmatprep.subr.mxu1 %v4413_v46 }
 0xf93   :  { %3952 = vmatmul.mubr.msk.f32.vlgmr.msra.gmra.mrb[24].mxu1 %vm275_vm6, %v4868_v14 }
 0xf94   :  { %3961 = vmatprep.mubr.msk.f32.mxu1 %vm4414_vm5, %v4413_v46 }
0x1062   :  { %v2010_v15 = vpop.f32.mrb[22].mxu1 }
0x1063   :  { %v3948_v19 = vpop.f32.mrb[23].mxu1  ;;  %v2090_v17 = vsel %vm275_vm6, %v2010_v15, -inf }
0x1064   :  { %2091 = vmax.xlane.f32.xlu0 %v2090_v17 }
0x1066   :  { %v2086_v20 = vpop.f32.mrb[24].mxu1 }
0x1067   :  { %v3953_v21 = vpop.f32.mrb[25].mxu1  ;;  %v2093_v22 = vsel %vm275_vm6, %v2086_v20, -inf }
0x1068   :  { %2094 = vmax.xlane.f32.xlu1 %v2093_v22 }
0x1079   :  { %2188 = vrot.lane.b32.xlu1 %v4853_v10, %s4415_s24 }
0x107a   :  { %2112 = vrot.lane.b32.xlu0 %v4855_v11, %s4415_s24 }
0x107d   :  { %2266 = vrot.lane.b32.xlu1 %v4855_v11, %s4418_s18 }
0x1081   :  { %2344 = vrot.lane.b32.xlu1 %v4853_v10, %s4418_s18 }
0x10f1   :  { %v2092_v23 = vpop.xlane.xlu0 %2091 }
0x10f2   :  { %v2096_v24 = vsub.f32 %v2010_v15, %v2092_v23 }
0x10f4   :  { %v2098_v50 = vmul.f32 1.442695, %v2096_v24 }
0x10f5   :  { %v2113_v25 = vpop.permute.xlu0 %2112  ;;  %v2095_v1 = vpop.xlane.xlu1 %2094 }
0x10f6   :  { %4201 = vpow2.f32 %v2098_v50  ;;  %v2097_v26 = vsub.f32 %v2086_v20, %v2095_v1  ;;  %3955 = vmatpush3.msra.mxu0 %v2113_v25 }
0x10f7   :  { %3964 = vmatprep.subr.mxu0 %v4413_v46 }
0x10f8   :  { %v2100_v0 = vmul.f32 1.442695, %v2097_v26 }
0x10f9   :  { %v2189_v27 = vpop.permute.xlu1 %2188 }
0x10fa   :  { %4203 = vpow2.f32 %v2100_v0  ;;  %3960 = vmatpush3.msra.mxu1 %v2189_v27 }
0x10fb   :  { %3969 = vmatprep.subr.mxu1 %v4413_v46 }
0x10fd   :  { %v2267_v32 = vpop.permute.xlu1 %2266 }
0x1100   :  { %v4202_v28 = vpop.eup %4201 }
0x1101   :  { %v2102_v29 = vsel %vm275_vm6, %v4202_v28, 0.0  ;;  %v2345_v33 = vpop.permute.xlu1 %2344 }
0x1102   :  { %2103 = vadd.xlane.f32.xlu0 %v2102_v29 }
0x1104   :  { %v4204_v30 = vpop.eup %4203 }
0x1105   :  { %v2105_v31 = vsel %vm275_vm6, %v4204_v30, 0.0 }
0x1106   :  { %2106 = vadd.xlane.f32.xlu1 %v2105_v31 }
0x1117   :  { %2342 = vrot.lane.b32.xlu1 %v4868_v14, %s4418_s18 }
0x1118   :  { %2264 = vrot.lane.b32.xlu0 %v4860_v52, %s4418_s18 }
0x118f   :  { %v2104_v34 = vpop.xlane.xlu0 %2103 }
0x1190   :  { %4205 = vrcp.f32 %v2104_v34 }
0x1193   :  { %v2107_v35 = vpop.xlane.xlu1 %2106  ;;  %v2265_v40 = vpop.permute.xlu0 %2264 }
0x1194   :  { %4207 = vrcp.f32 %v2107_v35 }
0x1197   :  { %v2343_v41 = vpop.permute.xlu1 %2342 }
0x119a   :  { %v4206_v36 = vpop.eup %4205 }
0x119b   :  { %v2110_v37 = vmul.f32 %v4206_v36, %v4202_v28 }
0x119d   :  { %3957 = vmatmul.mubr.msk.f32.vlgmr.msra.gmra.mrb[18].mxu0 %vm275_vm6, %v2110_v37 }
0x119e   :  { %v4208_v38 = vpop.eup %4207  ;;  %3965 = vmatpush3.xpose.msk.msra.mxu0 %vm275_vm6, %v2267_v32  ;;  %3966 = vmatprep.mubr.msk.f32.mxu0 %vm4414_vm5, %v4413_v46 }
0x119f   :  { %v2111_v39 = vmul.f32 %v4208_v38, %v4204_v30  ;;  %3974 = vmatprep.subr.mxu0 %v4413_v46 }
0x11a1   :  { %3962 = vmatmul.mubr.msk.f32.vlgmr.msra.gmra.mrb[26].mxu1 %vm275_vm6, %v2111_v39  ;;  %3967 = vmatmul.mubr.msk.f32.vlgmr.msra.gmra.mrb[20].mxu0 %vm275_vm6, %v2265_v40 }
0x11a2   :  { %3970 = vmatpush3.xpose.msk.msra.mxu1 %vm275_vm6, %v2345_v33  ;;  %3971 = vmatprep.mubr.msk.f32.mxu1 %vm4414_vm5, %v4413_v46 }
0x11a3   :  { %3979 = vmatprep.subr.mxu1 %v4413_v46  ;;  %3976 = vmatprep.mubr.msk.f32.mxu0 %vm4414_vm5, %v4413_v46 }
0x11a5   :  { %3972 = vmatmul.mubr.msk.f32.vlgmr.msra.gmra.mrb[28].mxu1 %vm275_vm6, %v2343_v41 }
0x11a6   :  { %3981 = vmatprep.mubr.msk.f32.mxu1 %vm4414_vm5, %v4413_v46 }
0x1270   :  { %v4909_v42 = vpop.f32.mrb[18].mxu0 }
0x1271   :  { %v3958_v47 = vpop.f32.mrb[19].mxu0 }
0x1274   :  { %v4911_v43 = vpop.f32.mrb[26].mxu1  ;;  %v2338_v44 = vpop.f32.mrb[20].mxu0 }
0x1275   :  { %v3963_v45 = vpop.f32.mrb[27].mxu1  ;;  %v3968_v49 = vpop.f32.mrb[21].mxu0  ;;  %v2420_v51 = vsel %vm275_vm6, %v2338_v44, -inf }
0x1276   :  { %2421 = vmax.xlane.f32.xlu0 %v2420_v51 }
0x1278   :  { %v2416_v53 = vpop.f32.mrb[28].mxu1 }
0x1279   :  { %v3973_v54 = vpop.f32.mrb[29].mxu1  ;;  %v2423_v55 = vsel %vm275_vm6, %v2416_v53, -inf }
0x127a   :  { %2424 = vmax.xlane.f32.xlu1 %v2423_v55 }
0x128b   :  { %2518 = vrot.lane.b32.xlu1 %v4853_v10, %s4417_s0 }
0x128c   :  { %2442 = vrot.lane.b32.xlu0 %v4855_v11, %s4417_s0 }
0x128f   :  { %2596 = vrot.lane.b32.xlu1 %v4855_v11, %s4421_s6 }
0x1293   :  { %2674 = vrot.lane.b32.xlu1 %v4853_v10, %s4421_s6 }
0x1297   :  { %2672 = vrot.lane.b32.xlu1 %v4868_v14, %s4421_s6 }
0x1303   :  { %v2422_v56 = vpop.xlane.xlu0 %2421 }
0x1304   :  { %v2426_v57 = vsub.f32 %v2338_v44, %v2422_v56 }
0x1306   :  { %v2428_v48 = vmul.f32 1.442695, %v2426_v57 }
0x1307   :  { %v2443_v58 = vpop.permute.xlu0 %2442  ;;  %v2425_v59 = vpop.xlane.xlu1 %2424 }
0x1308   :  { %4209 = vpow2.f32 %v2428_v48  ;;  %v2427_v60 = vsub.f32 %v2416_v53, %v2425_v59  ;;  %3975 = vmatpush3.msra.mxu0 %v2443_v58 }
0x1309   :  { %3984 = vmatprep.subr.mxu0 %v4413_v46 }
0x130a   :  { %v2430_v61 = vmul.f32 1.442695, %v2427_v60 }
0x130b   :  { %v2519_v62 = vpop.permute.xlu1 %2518 }
0x130c   :  { %4211 = vpow2.f32 %v2430_v61  ;;  %3980 = vmatpush3.msra.mxu1 %v2519_v62 }
0x130d   :  { %3989 = vmatprep.subr.mxu1 %v4413_v46 }
0x130f   :  { %v2597_v7 = vpop.permute.xlu1 %2596 }
0x1312   :  { %v4210_v63 = vpop.eup %4209 }
0x1313   :  { %v2432_v2 = vsel %vm275_vm6, %v4210_v63, 0.0  ;;  %v2675_v13 = vpop.permute.xlu1 %2674 }
0x1314   :  { %2433 = vadd.xlane.f32.xlu0 %v2432_v2 }
0x1316   :  { %v4212_v3 = vpop.eup %4211 }
0x1317   :  { %v2435_v4 = vsel %vm275_vm6, %v4212_v3, 0.0  ;;  %v2673_v17 = vpop.permute.xlu1 %2672 }
0x1318   :  { %2436 = vadd.xlane.f32.xlu0 %v2435_v4 }
0x132e   :  { %2594 = vrot.lane.b32.xlu0 %v4860_v52, %s4421_s6 }
0x13a1   :  { %v2434_v5 = vpop.xlane.xlu0 %2433 }
0x13a2   :  { %4213 = vrcp.f32 %v2434_v5 }
0x13a5   :  { %v2437_v6 = vpop.xlane.xlu0 %2436 }
0x13a6   :  { %4215 = vrcp.f32 %v2437_v6 }
0x13a9   :  { %v2595_v19 = vpop.permute.xlu0 %2594 }
0x13ac   :  { %v4214_v8 = vpop.eup %4213 }
0x13ad   :  { %v2440_v9 = vmul.f32 %v4214_v8, %v4210_v63 }
0x13af   :  { %3977 = vmatmul.mubr.msk.f32.vlgmr.msra.gmra.mrb[22].mxu0 %vm275_vm6, %v2440_v9 }
0x13b0   :  { %v4216_v12 = vpop.eup %4215  ;;  %3985 = vmatpush3.xpose.msk.msra.mxu0 %vm275_vm6, %v2597_v7  ;;  %3986 = vmatprep.mubr.msk.f32.mxu0 %vm4414_vm5, %v4413_v46 }
0x13b1   :  { %v2441_v15 = vmul.f32 %v4216_v12, %v4212_v3  ;;  %3994 = vmatprep.subr.mxu0 %v4413_v46 }
0x13b3   :  { %3982 = vmatmul.mubr.msk.f32.vlgmr.msra.gmra.mrb[30].mxu1 %vm275_vm6, %v2441_v15  ;;  %3987 = vmatmul.mubr.msk.f32.vlgmr.msra.gmra.mrb[24].mxu0 %vm275_vm6, %v2595_v19 }
0x13b4   :  { %3990 = vmatpush3.xpose.msk.msra.mxu1 %vm275_vm6, %v2675_v13  ;;  %3991 = vmatprep.mubr.msk.f32.mxu1 %vm4414_vm5, %v4413_v46 }
0x13b5   :  { %3999 = vmatprep.subr.mxu1 %v4413_v46  ;;  %3996 = vmatprep.mubr.msk.f32.mxu0 %vm4414_vm5, %v4413_v46 }
0x13b7   :  { %3992 = vmatmul.mubr.msk.f32.vlgmr.msra.gmra.mrb[32].mxu1 %vm275_vm6, %v2673_v17 }
0x13b8   :  { %4001 = vmatprep.mubr.msk.f32.mxu1 %vm4414_vm5, %v4413_v46 }
0x1482   :  { %v4947_v20 = vpop.f32.mrb[22].mxu0 }
0x1483   :  { %v3978_v21 = vpop.f32.mrb[23].mxu0 }
0x1484   :  { %v3284_v21 = vld [vmem:[#allocation8] sm:$0xff] }
0x1486   :  { %v4949_v22 = vpop.f32.mrb[30].mxu1  ;;  %v2668_v23 = vpop.f32.mrb[24].mxu0 }
0x1487   :  { %v3983_v24 = vpop.f32.mrb[31].mxu1  ;;  %v3988_v50 = vpop.f32.mrb[25].mxu0  ;;  %v2750_v25 = vsel %vm275_vm6, %v2668_v23, -inf }
0x1488   :  { %2751 = vmax.xlane.f32.xlu0 %v2750_v25  ;;  %v3287_v24 = vld [vmem:[#allocation8 + $0x18] sm:$0xff] }
0x148a   :  { %v2746_v1 = vpop.f32.mrb[32].mxu1 }
0x148b   :  { %v3993_v26 = vpop.f32.mrb[33].mxu1  ;;  %v2753_v0 = vsel %vm275_vm6, %v2746_v1, -inf }
0x148c   :  { %2754 = vmax.xlane.f32.xlu1 %v2753_v0 }
0x149d   :  { %2848 = vrot.lane.b32.xlu1 %v4853_v10, %s4420_s30 }
0x149e   :  { %2772 = vrot.lane.b32.xlu0 %v4855_v11, %s4420_s30 }
0x14a1   :  { %2926 = vrot.lane.b32.xlu1 %v4855_v11, %s4424_s29 }
0x14a5   :  { %3004 = vrot.lane.b32.xlu1 %v4853_v10, %s4424_s29 }
0x14a9   :  { %3002 = vrot.lane.b32.xlu1 %v4868_v14, %s4424_s29 }
0x1515   :  { %v2752_v27 = vpop.xlane.xlu0 %2751 }
0x1516   :  { %v2756_v28 = vsub.f32 %v2668_v23, %v2752_v27 }
0x1518   :  { %v2758_v29 = vmul.f32 1.442695, %v2756_v28 }
0x1519   :  { %v2773_v30 = vpop.permute.xlu0 %2772  ;;  %v2755_v31 = vpop.xlane.xlu1 %2754 }
0x151a   :  { %4217 = vpow2.f32 %v2758_v29  ;;  %v2757_v32 = vsub.f32 %v2746_v1, %v2755_v31  ;;  %3995 = vmatpush3.msra.mxu0 %v2773_v30 }
0x151b   :  { %4004 = vmatprep.subr.mxu0 %v4413_v46 }
0x151c   :  { %v2760_v33 = vmul.f32 1.442695, %v2757_v32 }
0x151d   :  { %v2849_v34 = vpop.permute.xlu1 %2848 }
0x151e   :  { %4219 = vpow2.f32 %v2760_v33  ;;  %4000 = vmatpush3.msra.mxu1 %v2849_v34 }
0x151f   :  { %4009 = vmatprep.subr.mxu1 %v4413_v46 }
0x1521   :  { %v2927_v40 = vpop.permute.xlu1 %2926 }
0x1524   :  { %v4218_v35 = vpop.eup %4217 }
0x1525   :  { %v2762_v36 = vsel %vm275_vm6, %v4218_v35, 0.0  ;;  %v3005_v45 = vpop.permute.xlu1 %3004 }
0x1526   :  { %2763 = vadd.xlane.f32.xlu0 %v2762_v36 }
0x1528   :  { %v4220_v14 = vpop.eup %4219 }
0x1529   :  { %v2765_v37 = vsel %vm275_vm6, %v4220_v14, 0.0  ;;  %v3003_v51 = vpop.permute.xlu1 %3002 }
0x152a   :  { %2766 = vadd.xlane.f32.xlu0 %v2765_v37 }
0x1540   :  { %2924 = vrot.lane.b32.xlu0 %v4860_v52, %s4424_s29 }
0x15b3   :  { %v2764_v38 = vpop.xlane.xlu0 %2763 }
0x15b4   :  { %4221 = vrcp.f32 %v2764_v38 }
0x15b7   :  { %v2767_v39 = vpop.xlane.xlu0 %2766 }
0x15b8   :  { %4223 = vrcp.f32 %v2767_v39 }
0x15bb   :  { %v2925_v52 = vpop.permute.xlu0 %2924 }
0x15be   :  { %v4222_v41 = vpop.eup %4221 }
0x15bf   :  { %v2770_v47 = vmul.f32 %v4222_v41, %v4218_v35 }
0x15c1   :  { %3997 = vmatmul.mubr.msk.f32.vlgmr.msra.gmra.mrb[26].mxu0 %vm275_vm6, %v2770_v47 }
0x15c2   :  { %v4224_v44 = vpop.eup %4223  ;;  %4005 = vmatpush3.xpose.msk.msra.mxu0 %vm275_vm6, %v2927_v40  ;;  %4006 = vmatprep.mubr.msk.f32.mxu0 %vm4414_vm5, %v4413_v46 }
0x15c3   :  { %v2771_v49 = vmul.f32 %v4224_v44, %v4220_v14  ;;  %4014 = vmatprep.subr.mxu0 %v4413_v46 }
0x15c5   :  { %4002 = vmatmul.mubr.msk.f32.vlgmr.msra.gmra.mrb[34].mxu1 %vm275_vm6, %v2771_v49  ;;  %4007 = vmatmul.mubr.msk.f32.vlgmr.msra.gmra.mrb[28].mxu0 %vm275_vm6, %v2925_v52 }
0x15c6   :  { %4010 = vmatpush3.xpose.msk.msra.mxu1 %vm275_vm6, %v3005_v45  ;;  %4011 = vmatprep.mubr.msk.f32.mxu1 %vm4414_vm5, %v4413_v46 }
0x15c7   :  { %4019 = vmatprep.subr.mxu1 %v4413_v46  ;;  %4016 = vmatprep.mubr.msk.f32.mxu0 %vm4414_vm5, %v4413_v46 }
0x15c9   :  { %4012 = vmatmul.mubr.msk.f32.vlgmr.msra.gmra.mrb[36].mxu1 %vm275_vm6, %v3003_v51 }
0x15ca   :  { %4021 = vmatprep.mubr.msk.f32.mxu1 %vm4414_vm5, %v4413_v46 }
0x1694   :  { %v2844_v53 = vpop.f32.mrb[26].mxu0 }
0x1695   :  { %v3998_v54 = vpop.f32.mrb[27].mxu0 }
0x1698   :  { %v2920_v55 = vpop.f32.mrb[34].mxu1  ;;  %v2998_v56 = vpop.f32.mrb[28].mxu0 }
0x1699   :  { %v4003_v57 = vpop.f32.mrb[35].mxu1  ;;  %v4008_v48 = vpop.f32.mrb[29].mxu0  ;;  %v3080_v58 = vsel %vm275_vm6, %v2998_v56, -inf }
0x169a   :  { %3081 = vmax.xlane.f32.xlu0 %v3080_v58  ;;  %v3427_v57 = vld [vmem:[#allocation10 + $0x10] sm:$0xff]  ;;  %v3428_v58 = vld [vmem:[#allocation10 + $0x18] sm:$0xff] }
0x169c   :  { %v3076_v59 = vpop.f32.mrb[36].mxu1 }
0x169d   :  { %v4013_v60 = vpop.f32.mrb[37].mxu1  ;;  %v3083_v61 = vsel %vm275_vm6, %v3076_v59, -inf }
0x169e   :  { %3084 = vmax.xlane.f32.xlu1 %v3083_v61  ;;  %v3519_v60 = vld [vmem:[%s5095_s9] sm:$0xff]  ;;  %v3520_v61 = vld [vmem:[%s5095_s9 + $0x8] sm:$0xff] }
0x16af   :  { %3178 = vrot.lane.b32.xlu1 %v4853_v10, %s4423_s7 }
0x16b3   :  { %3256 = vrot.lane.b32.xlu1 %v4947_v20, %s4408_s21 }
0x16b7   :  { %3258 = vrot.lane.b32.xlu1 %v4949_v22, %s4408_s21  ;;  %v3285_v22 = vld [vmem:[#allocation8 + $0x8] sm:$0xff] }
0x16b8   :  { %v4097_v23 = vpack.c.bf16 %v3285_v22, %v3284_v21 }
0x16bb   :  { %3266 = vrot.lane.b32.xlu1 %v2920_v55, %s4426_s14  ;;  %v3425_v55 = vld [vmem:[#allocation10] sm:$0xff] }
0x1727   :  { %v3082_v46 = vpop.xlane.xlu0 %3081 }
0x1728   :  { %v3086_v62 = vsub.f32 %v2998_v56, %v3082_v46  ;;  %v3426_v56 = vld [vmem:[#allocation10 + $0x8] sm:$0xff]  ;;  %v3521_v46 = vld [vmem:[%s5095_s9 + $0x10] sm:$0xff] }
0x1729   :  { %v4105_v48 = vpack.c.bf16 %v3426_v56, %v3425_v55 }
0x172a   :  { %v3088_v63 = vmul.f32 1.442695, %v3086_v62  ;;  %v4113_v62 = vpack.c.bf16 %v3520_v61, %v3519_v60 }
0x172b   :  { %v3085_v2 = vpop.xlane.xlu1 %3084 }
0x172c   :  { %4225 = vpow2.f32 %v3088_v63  ;;  %v3087_v3 = vsub.f32 %v3076_v59, %v3085_v2  ;;  %v4109_v59 = vpack.c.bf16 %v3428_v58, %v3427_v57  ;;  %v3522_v63 = vld [vmem:[%s5095_s9 + $0x18] sm:$0xff] }
0x172d   :  { %v4117_v2 = vpack.c.bf16 %v3522_v63, %v3521_v46 }
0x172e   :  { %v3090_v4 = vmul.f32 1.442695, %v3087_v3  ;;  %v3523_v3 = vld [vmem:[%s5095_s9 + $0x20] sm:$0xff] }
0x172f   :  { %v3179_v5 = vpop.permute.xlu1 %3178 }
0x1730   :  { %4227 = vpow2.f32 %v3090_v4  ;;  %4020 = vmatpush3.msra.mxu1 %v3179_v5  ;;  %v3524_v4 = vld [vmem:[%s5095_s9 + $0x28] sm:$0xff] }
0x1731   :  { %4106 = vmatprep.subr.bf16.mxu1 %v4105_v48  ;;  %v4121_v5 = vpack.c.bf16 %v3524_v4, %v3523_v3 }
0x1733   :  { %v3257_v27 = vpop.permute.xlu1 %3256 }
0x1734   :  { %v3278_v30 = vsel %vm275_vm6, %v4909_v42, %v3257_v27 }
0x1736   :  { %v4226_v6 = vpop.eup %4225 }
0x1737   :  { %v3092_v10 = vsel %vm275_vm6, %v4226_v6, 0.0  ;;  %v3259_v28 = vpop.permute.xlu1 %3258 }
0x1738   :  { %3093 = vadd.xlane.f32.xlu0 %v3092_v10  ;;  %v3279_v35 = vsel %vm275_vm6, %v4911_v43, %v3259_v28 }
0x173a   :  { %v4228_v7 = vpop.eup %4227 }
0x173b   :  { %v3095_v8 = vsel %vm275_vm6, %v4228_v7, 0.0  ;;  %v3267_v31 = vpop.permute.xlu1 %3266 }
0x173c   :  { %3096 = vadd.xlane.f32.xlu0 %v3095_v8  ;;  %v3281_v36 = vsel %vm1619_vm8, %v3279_v35, %v3267_v31  ;;  %v3704_v35 = vld [vmem:[%s5094_s8] ss:$0 sm:$0xff] }
0x1752   :  { %3102 = vrot.lane.b32.xlu0 %v4855_v11, %s4423_s7  ;;  %v3286_v11 = vld [vmem:[#allocation8 + $0x10] sm:$0xff] }
0x1753   :  { %v4101_v50 = vpack.c.bf16 %v3287_v24, %v3286_v11 }
0x1756   :  { %3264 = vrot.lane.b32.xlu0 %v2844_v53, %s4426_s14 }
0x17c5   :  { %v3094_v9 = vpop.xlane.xlu0 %3093 }
0x17c6   :  { %4229 = vrcp.f32 %v3094_v9 }
0x17c9   :  { %v3097_v12 = vpop.xlane.xlu0 %3096 }
0x17ca   :  { %4231 = vrcp.f32 %v3097_v12 }
0x17cd   :  { %v3103_v13 = vpop.permute.xlu0 %3102 }
0x17ce   :  { %4015 = vmatpush3.msra.mxu0 %v3103_v13 }
0x17cf   :  { %4098 = vmatprep.subr.bf16.mxu0 %v4097_v23 }
0x17d0   :  { %v4230_v15 = vpop.eup %4229 }
0x17d1   :  { %v3100_v19 = vmul.f32 %v4230_v15, %v4226_v6  ;;  %v3265_v29 = vpop.permute.xlu0 %3264 }
0x17d2   :  { %v3280_v32 = vsel %vm1619_vm8, %v3278_v30, %v3265_v29 }
0x17d3   :  { %4017 = vmatmul.mubr.msk.f32.vlgmr.msra.gmra.mrb[30].mxu0 %vm275_vm6, %v3100_v19 }
0x17d4   :  { %v4232_v17 = vpop.eup %4231  ;;  %4100 = vmatpush3.bf16.msra.mxu0 %v4097_v23 }
0x17d5   :  { %v3101_v20 = vmul.f32 %v4232_v17, %v4228_v7  ;;  %4102 = vmatprep.subr.bf16.mxu0 %v4101_v50 }
0x17d7   :  { %4022 = vmatmul.mubr.msk.f32.vlgmr.msra.gmra.mrb[38].mxu1 %vm275_vm6, %v3101_v20 }
0x17d8   :  { %4104 = vmatpush3.bf16.msra.mxu0 %v4101_v50  ;;  %4108 = vmatpush3.bf16.msra.mxu1 %v4105_v48 }
0x17d9   :  { %4110 = vmatprep.subr.bf16.mxu1 %v4109_v59  ;;  %4114 = vmatprep.subr.bf16.mxu0 %v4113_v62 }
0x17dc   :  { %4112 = vmatpush3.bf16.msra.mxu1 %v4109_v59 }
0x18a6   :  { %v3174_v25 = vpop.f32.mrb[30].mxu0 }
0x18a7   :  { %3272 = vrot.lane.b32.xlu0 %v3174_v25, %s4427_s19  ;;  %v4018_v1 = vpop.f32.mrb[31].mxu0  ;;  %v3702_v25 = vld [vmem:[%s5097_s11 + $0x2] ss:$0 sm:$0xff] }
0x18aa   :  { %v3250_v26 = vpop.f32.mrb[38].mxu1 }
0x18ab   :  { %3274 = vrot.lane.b32.xlu1 %v3250_v26, %s4427_s19  ;;  %v4023_v0 = vpop.f32.mrb[39].mxu1  ;;  %v3703_v26 = vld [vmem:[%s5098_s12 + $0x2] ss:$0 sm:$0xff] }
0x1919   :  { %v3273_v33 = vpop.permute.xlu0 %3272 }
0x191a   :  { %v3282_v34 = vsel %vm1622_vm7, %v3280_v32, %v3273_v33  ;;  %v3525_v32 = vld [vmem:[%s5095_s9 + $0x30] sm:$0xff]  ;;  %v3526_v33 = vld [vmem:[%s5095_s9 + $0x38] sm:$0xff]  ;;  %s4428_s9 = smov [#allocation13]  }
0x191b   :  { %4032 = vmatprep.mubr.msk.f32.mxu0 %vm131_vm0, %v3282_v34  ;;  %v4125_v34 = vpack.c.bf16 %v3526_v33, %v3525_v32  ;;  %s3625_s4 = sshll.u32 %s4428_s9, 4  ;;  %s3626_s4 = int_to_ptr.vmem [resolvable:$true] %s3625_s4 }
0x191c   :  { %s4373_s8 = scalar_lea.vmem %s3626_s4, 256  ;;  %p4378_p7 = scmp.lt.s32.totalorder %s3626_s4, %s3626_s4 }
0x191d   :  { %v3275_v14 = vpop.permute.xlu1 %3274  ;;  %p4374_p6 = scmp.ne.s32.totalorder %s3626_s4, %s4373_s8  ;;  %p4379_p8 = scmp.lt.s32.totalorder %s4373_s8, %s4373_s8 }
0x191e   :  { %v3283_v37 = vsel %vm1622_vm7, %v3281_v36, %v3275_v14 }
0x191f   :  { %4033 = vmatmul.mubr.msk.f32.vlgmr.msra.gmra.mrb[32].mxu0 %vm131_vm0, %v3283_v37  ;;  %p4380_p9 = por %p4379_p8, %p4378_p7 }
0x1920   :  { %4116 = vmatpush3.bf16.msra.mxu0 %v4113_v62 }
0x1921   :  { %4118 = vmatprep.subr.bf16.mxu0 %v4117_v2  ;;  %p4381_p10 = pnand %p4380_p9, %p4374_p6 }
0x1924   :  { %4120 = vmatpush3.bf16.msra.mxu0 %v4117_v2 }
0x1925   :  { %4122 = vmatprep.subr.bf16.mxu0 %v4121_v5 }
0x1928   :  { %4124 = vmatpush3.bf16.msra.mxu0 %v4121_v5 }
0x1929   :  { %4126 = vmatprep.subr.bf16.mxu0 %v4125_v34 }
0x192c   :  { %4128 = vmatpush3.bf16.msra.mxu0 %v4125_v34 }
0x19f2   :  { %v4034_v38 = vpop.f32.mrb[32].mxu0 }
0x19f3   :  { %v5014_v42 = vadd.f32 %v4034_v38, %v4807_v16  ;;  %v3360_v39 = vpop.f32.mrb[33].mxu0 }
0x19f4   :  { %v5017_v40 = vadd.f32 %v3360_v39, %v4810_v18 }
0x19f5   :  { %v3376_v41 = vsel %vm131_vm0, %v5014_v42, 0.0 }
0x19f6   :  { %3377 = vadd.xlane.f32.xlu1 %v3376_v41  ;;  %v3373_v43 = vsel %vm131_vm0, %v5017_v40, 0.0 }
0x19f7   :  { %3374 = vadd.xlane.f32.xlu0 %v3373_v43  ;;  %v3707_v43 = vld [vmem:[#allocation11] ss:$0 sm:$0xff] }
0x1a83   :  { %v3378_v47 = vpop.xlane.xlu1 %3377 }
0x1a84   :  { %v3380_v44 = vmul.f32 0.03125, %v3378_v47  ;;  %v3375_v45 = vpop.xlane.xlu0 %3374 }
0x1a85   :  { %v3379_v49 = vmul.f32 0.03125, %v3375_v45 }
0x1a86   :  { %v5024_v52 = vsub.f32 %v5014_v42, %v3380_v44 }
0x1a87   :  { %v3381_v16 = vsub.f32 %v5017_v40, %v3379_v49 }
0x1a88   :  { %v3384_v53 = vmul.f32 %v5024_v52, %v5024_v52 }
0x1a89   :  { %v3383_v51 = vmul.f32 %v3381_v16, %v3381_v16 }
0x1a8a   :  { %v3388_v54 = vsel %vm131_vm0, %v3384_v53, 0.0 }
0x1a8b   :  { %v3385_v18 = vsel %vm131_vm0, %v3383_v51, 0.0 }
0x1a8c   :  { %3386 = vadd.xlane.f32.xlu0 %v3385_v18 }
0x1a90   :  { %3389 = vadd.xlane.f32.xlu0 %v3388_v54 }
0x1b19   :  { %v3387_v6 = vpop.xlane.xlu0 %3386 }
0x1b1a   :  { %v3391_v10 = vmul.f32 0.032258064, %v3387_v6 }
0x1b1c   :  { %4233 = vrsqrt.f32 %v3391_v10  ;;  %vm3395_vm13 = vcmp.eq.f32.partialorder %v3391_v10, inf  ;;  %v3398_v13 = vand.u32 2147483648, %v3391_v10  ;;  %vm3397_vm14 = vcmp.eq.f32.partialorder %v3391_v10, 0.0 }
0x1b1d   :  { %v3390_v7 = vpop.xlane.xlu0 %3389 }
0x1b1e   :  { %v3392_v8 = vmul.f32 0.032258064, %v3390_v7 }
0x1b20   :  { %4235 = vrsqrt.f32 %v3392_v8  ;;  %vm3402_vm15 = vcmp.eq.f32.partialorder %v3392_v8, inf  ;;  %v3405_v22 = vand.u32 2147483648, %v3392_v8  ;;  %vm3404_vm1 = vcmp.eq.f32.partialorder %v3392_v8, 0.0 }
0x1b26   :  { %v4234_v9 = vpop.eup %4233 }
0x1b27   :  { %v3394_v12 = vmul.f32 %v4234_v9, %v3391_v10 }
0x1b29   :  { %v3396_v15 = vsel %vm3395_vm13, %v3391_v10, %v3394_v12 }
0x1b2a   :  { %v4236_v19 = vpop.eup %4235  ;;  %v3399_v17 = vsel %vm3397_vm14, %v3398_v13, %v3396_v15 }
0x1b2b   :  { %v3407_v20 = vadd.f32 1e-06, %v3399_v17  ;;  %v3401_v21 = vmul.f32 %v4236_v19, %v3392_v8 }
0x1b2d   :  { %4237 = vrcp.f32 %v3407_v20  ;;  %v3403_v23 = vsel %vm3402_vm15, %v3392_v8, %v3401_v21 }
0x1b2e   :  { %v3406_v11 = vsel %vm3404_vm1, %v3405_v22, %v3403_v23 }
0x1b2f   :  { %v3408_v24 = vadd.f32 1e-06, %v3406_v11 }
0x1b31   :  { %4239 = vrcp.f32 %v3408_v24 }
0x1b37   :  { %v4238_v50 = vpop.eup %4237 }
0x1b38   :  { %v3411_v1 = vmul.f32 %v4238_v50, %v3381_v16 }
0x1b3a   :  { %v3417_v0 = vmul.f32 %v3702_v25, %v3411_v1 }
0x1b3b   :  { %v4240_v27 = vpop.eup %4239 }
0x1b3c   :  { %v3412_v28 = vmul.f32 %v4240_v27, %v5024_v52  ;;  %v3423_v29 = vadd.f32 %v3703_v26, %v3417_v0 }
0x1b3e   :  { %v3418_v30 = vmul.f32 %v3702_v25, %v3412_v28  ;;  %4043 = vmatprep.mubr.msk.f32.mxu1 %vm131_vm0, %v3423_v29 }
0x1b40   :  { %v3424_v31 = vadd.f32 %v3703_v26, %v3418_v30 }
0x1b42   :  { %4044 = vmatmul.mubr.msk.f32.vlgmr.msra.gmra.mrb[40].mxu1 %vm131_vm0, %v3424_v31 }
0x1c15   :  { %v4045_v36 = vpop.f32.mrb[40].mxu1 }
0x1c16   :  { %v3514_v14 = vadd.f32 %v4045_v36, %v3704_v35  ;;  %v3508_v37 = vpop.f32.mrb[41].mxu1 }
0x1c17   :  { %v3509_v38 = vadd.f32 %v3704_v35, %v3508_v37 }
0x1c18   :  { %v3518_v41 = vmax.f32 %v3514_v14, 0.0 }
0x1c19   :  { %v3517_v39 = vmax.f32 %v3509_v38, 0.0 }
0x1c1b   :  { %4062 = vmatprep.mubr.msk.f32.mxu0 %vm3534_vm2, %v3517_v39 }
0x1c1c   :  { %4063 = vmatmul.mubr.msk.f32.vlgmr.msra.gmra.mrb[34].mxu0 %vm3534_vm2, %v3518_v41 }
0x1cef   :  { %v4064_v47 = vpop.f32.mrb[34].mxu0 }
0x1cf0   :  { %v3613_v44 = vadd.f32 %v4064_v47, %v3707_v43  ;;  %v3607_v45 = vpop.f32.mrb[35].mxu0 }
0x1cf1   :  { %v3608_v49 = vadd.f32 %v3707_v43, %v3607_v45 }
0x1cf2   :  { %v3617_v52 = vadd.f32 %v3613_v44, %v5014_v42 }
0x1cf3   :  { %v3616_v16 = vadd.f32 %v3608_v49, %v5017_v40 }
0x1cf4   :  { %3619 = vst.msk [vmem:[#allocation13 + $0x8] sm:$0xff] %vm131_vm0, %v3617_v52 }
0x1cf5   :  { %3618 = vst.msk [vmem:[#allocation13] sm:$0xff] %vm131_vm0, %v3616_v16 }
0x1cf6   :  { %4384 = shalt.err (!%p4381_p10)
}
0x1cf7   :  { %s4385_s17 = scalar_lea.hbm %s5099_s13, 256 }
0x1cf8   :  { %p4386_p11 = scmp.ne.s32.totalorder %s5099_s13, %s4385_s17  ;;  %p4389_p12 = scmp.lt.u32.totalorder %s4385_s17, %s5099_s13 }
0x1cfa   :  { %p4391_p13 = pnand %p4389_p12, %p4386_p11 }
0x1cfc   :  { %4394 = shalt.err (!%p4391_p13)
}
0x1cfd   :  { %3631 = dma.vmem_to_hbm [thread:$0]  %s3626_s4, 256, %s5099_s13, [#allocation4], %s4407_s20, %s4407_s20, %s4408_s21  }
0x1cfe   :  { %4403 = dma.done.wait [#allocation4], 256  }
0x1cff   :  { %4404 = vsyncadd [#allocation4], 4294967040 }
0x1d00   :  { %3635 = vsyncpa [#allocation3], 1 }
0x1d01   :  { %3636 = vsyncpa [#allocation6], 1 }
0x1d02   :  { %3637 = vsyncpa [#allocation9], 1 }
0x1d03   :  { %3638 = vsyncpa [#allocation12], 1 }
0x1d04   :  { %3639 = vsyncpa [#allocation4], 1 }

</bundles_post_ra>
